<compile_context>
chip_gen: v6e
topology: v6e:2x2x1
jax: 0.10.0
libtpu: 0.0.40
codegen_flags: <defaults>
</compile_context>

<pallas_src>
import functools

import jax
import jax.numpy as jnp
from jax import lax
from jax.experimental import pallas as pl
from jax.experimental.pallas import tpu as pltpu


def _egcl_kernel(h_ref, coord_ref, ea_ref, row_ref, col_ref,
                 wkT_ref, root_ref, bias_ref,
                 w1_ref, b1_ref, w2_ref, smd_ref,
                 h_out_ref, coord_out_ref,
                 seg_acc,
                 *, n_nodes, out_nf, n_attr_aug, inv_depth):
    f32 = jnp.float32
    N = n_nodes
    H = out_nf
    k = pl.program_id(0)
    last = pl.num_programs(0) - 1

    @pl.when(k == 0)
    def _init():
        seg_acc[...] = jnp.zeros_like(seg_acc)

    h = h_ref[...]                                   # (N, H)
    ea = ea_ref[...]                                 # (tE, A+1) last col = 1 (0 for pads)
    row = row_ref[...]                               # (1, tE) int32 (-1 = padded edge)
    col = col_ref[...]                               # (tE, 1) int32
    tE = ea.shape[0]

    # ---- gather h[col]: (tE,N) one-hot @ (N,H) -> straight MXU matmul, no transpose ----
    onehot_col = (lax.broadcasted_iota(jnp.int32, (tE, N), 1) == col).astype(f32)
    h_col = jnp.dot(onehot_col, h, preferred_element_type=f32)            # (tE, H)

    # ---- per-edge weight contraction: single fused MXU matmul (bk folded into wk) ----
    # edge_feat[e,o] = sum_a ea_aug[e,a] * (h_col @ wkT_aug)[e, a*H+o]
    P = jnp.dot(h_col, wkT_ref[...], preferred_element_type=f32)          # (tE, (A+1)*H)
    edge_feat = ea[:, 0:1] * P[:, 0:H]
    for a in range(1, n_attr_aug):                                        # VPU mul-adds
        edge_feat = edge_feat + ea[:, a:a + 1] * P[:, a * H:(a + 1) * H]

    # ---- coord_mlp: Linear(H,2H) -> ReLU -> Linear(2H,1, no bias) ----
    hid = jnp.maximum(
        jnp.dot(edge_feat, w1_ref[...], preferred_element_type=f32) + b1_ref[...], 0.0)
    trans = jnp.dot(hid, w2_ref[...], preferred_element_type=f32)         # (tE, 1)

    # ---- fused segment reduction: [edge_feat | trans | 1] in one scatter matmul ----
    # padded edges have row = -1 -> one-hot column is all zeros -> contribute nothing.
    onehot_row = (lax.broadcasted_iota(jnp.int32, (N, tE), 0) == row).astype(f32)
    rhs = jnp.concatenate([edge_feat, trans, jnp.ones((tE, 1), f32)], axis=1)  # (tE, H+2)
    seg_acc[...] += jnp.dot(onehot_row, rhs, preferred_element_type=f32)

    @pl.when(k == last)
    def _finalize():
        acc = seg_acc[...]
        count = acc[:, H + 1:H + 2]
        inv = pl.reciprocal(jnp.maximum(count, 1.0), approx=True)         # EUP slot, ~free
        seg_feat = acc[:, :H] * inv                                       # (N, H)
        seg_trans = acc[:, H:H + 1] * inv                                 # (N, 1)

        # node_conv: residual + ReLU, /depth folded into a multiply.
        agg = (seg_feat + jnp.dot(h, root_ref[...], preferred_element_type=f32)
               + bias_ref[...])
        h_out_ref[...] = h + jnp.maximum(agg, 0.0) * inv_depth

        # coord_conv_mat2d: smd_stack = [smdy; -smdx] / depth precomputed in wrapper.
        delta = jnp.dot(smd_ref[...], seg_trans, preferred_element_type=f32)  # (2N, 1)
        coord_out_ref[...] = coord_ref[...] + jnp.concatenate(
            [delta[:N, :], delta[N:, :]], axis=1)


def _round_up(x, m):
    return (x + m - 1) // m * m


def e_gcl_gkn_forward(h, edge_index, coord, edge_attr, smdx, smdy, params, *,
                      depth, tile_edges=512):
    N, H = h.shape
    E, A = edge_attr.shape
    A_aug = A + 1

    # ---- trace-time parameter restructuring (zero in-kernel cost) ----
    # Fuse bk into wk: wk_aug[(A+1), H*H] with the last row = bk; the kernel then sees a
    # single matmul and the bias term rides in as the ones-column of edge_attr.
    wk_aug = jnp.concatenate(
        [params["wk"], params["bk"].reshape(1, H * H)], axis=0)            # (A+1, H*H)
    # W[e,i,o] = (ea_aug @ wk_aug)[i*H+o]  ->  wkT_aug[i, a*H+o] = wk_aug[a, i*H+o]
    wkT_aug = wk_aug.reshape(A_aug, H, H).transpose(1, 0, 2).reshape(H, A_aug * H)
    bias = params["bias"].reshape(1, H)
    b1 = params["b1"].reshape(1, -1)
    smd_stack = (jnp.concatenate([smdy, -smdx], axis=0) / depth).astype(jnp.float32)

    # ---- edge tiling (reduction grid axis); pad with row=-1 so pads drop out ----
    if E <= tile_edges:
        tE = _round_up(E, 8)              # single tile; block == full array dims
    else:
        tE = _round_up(tile_edges, 128)   # multi-tile: lane-major row blocks need %128
    E_pad = _round_up(E, tE)
    n_tiles = E_pad // tE
    pad = E_pad - E

    row = jnp.pad(edge_index[0].astype(jnp.int32), (0, pad),
                  constant_values=-1).reshape(1, E_pad)
    col = jnp.pad(edge_index[1].astype(jnp.int32), (0, pad),
                  constant_values=0).reshape(E_pad, 1)
    ones_col = jnp.ones((E, 1), jnp.float32)
    ea_aug = jnp.pad(
        jnp.concatenate([edge_attr.astype(jnp.float32), ones_col], axis=1),
        ((0, pad), (0, 0)))               # pads get all-zero rows (incl. ones column)

    args = (
        h.astype(jnp.float32), coord.astype(jnp.float32), ea_aug, row, col,
        wkT_aug.astype(jnp.float32),
        params["root"].astype(jnp.float32), bias.astype(jnp.float32),
        params["w1"].astype(jnp.float32), b1.astype(jnp.float32),
        params["w2"].astype(jnp.float32), smd_stack,
    )

    def fixed(a):  # whole array, resident across the edge-reduction axis
        nd = a.ndim
        return pl.BlockSpec(a.shape, lambda k, _nd=nd: (0,) * _nd)

    in_specs = [
        fixed(args[0]),                                   # h
        fixed(args[1]),                                   # coord
        pl.BlockSpec((tE, A_aug), lambda k: (k, 0)),      # edge_attr (+ones) tile
        pl.BlockSpec((1, tE), lambda k: (0, k)),          # row tile (lane-major)
        pl.BlockSpec((tE, 1), lambda k: (k, 0)),          # col tile (sublane-major)
        fixed(args[5]), fixed(args[6]), fixed(args[7]),
        fixed(args[8]), fixed(args[9]), fixed(args[10]), fixed(args[11]),
    ]

    kern = functools.partial(_egcl_kernel, n_nodes=N, out_nf=H, n_attr_aug=A_aug,
                             inv_depth=float(1.0 / depth))

    h_out, coord_out = pl.pallas_call(
        kern,
        out_shape=(jax.ShapeDtypeStruct((N, H), jnp.float32),
                   jax.ShapeDtypeStruct((N, 2), jnp.float32)),
        grid_spec=pltpu.PrefetchScalarGridSpec(
            num_scalar_prefetch=0,
            grid=(n_tiles,),
            in_specs=in_specs,
            out_specs=(pl.BlockSpec((N, H), lambda k: (0, 0)),
                       pl.BlockSpec((N, 2), lambda k: (0, 0))),
            scratch_shapes=[pltpu.VMEM((N, H + 2), jnp.float32)]),
        compiler_params=pltpu.CompilerParams(
            dimension_semantics=("arbitrary",),          # edge axis is a reduction
            vmem_limit_bytes=48 * 1024 * 1024),          # headroom incl. v7x (64 MiB)
    )(*args)
    return h_out, coord_out


def _reference(h, edge_index, coord, edge_attr, smdx, smdy, p, depth):
    """Pure-JAX mirror of the PyTorch forward (for verification only)."""
    row, col = edge_index
    N, H = h.shape
    E = edge_attr.shape[0]
    ko = edge_attr @ p["wk"] + p["bk"]
    w = ko.reshape(E, H, H)
    edge_feat = jnp.einsum("ei,eio->eo", h[col], w)
    hid = jax.nn.relu(edge_feat @ p["w1"] + p["b1"])
    trans = hid @ p["w2"]
    count = jnp.maximum(jax.ops.segment_sum(jnp.ones((E,)), row, N), 1.0)[:, None]
    seg_feat = jax.ops.segment_sum(edge_feat, row, N) / count
    seg_trans = jax.ops.segment_sum(trans, row, N) / count
    agg = seg_feat + h @ p["root"] + p["bias"]
    h_out = h + jax.nn.relu(agg) / depth
    hx = smdx @ seg_trans
    hy = smdy @ seg_trans
    coord_out = jnp.concatenate([hy, -hx], axis=1) / depth + coord
    return h_out, coord_out


def _make_case(key, N, E, H, A):
    keys = jax.random.split(key, 16)
    h = jax.random.normal(keys[0], (N, H), jnp.float32)
    coord = jax.random.normal(keys[1], (N, 2), jnp.float32)
    edge_attr = jax.random.normal(keys[2], (E, A), jnp.float32)
    row = jax.random.randint(keys[3], (E,), 0, N, jnp.int32)
    col = jax.random.randint(keys[4], (E,), 0, N, jnp.int32)
    edge_index = jnp.stack([row, col], axis=0)
    smdx = 0.1 * jax.random.normal(keys[5], (N, N), jnp.float32)
    smdy = 0.1 * jax.random.normal(keys[6], (N, N), jnp.float32)
    bound = 1.0 / jnp.sqrt(float(H))   # torch_geometric `uniform(size, ...)`
    params = {
        "wk": 0.05 * jax.random.normal(keys[7], (A, H * H), jnp.float32),
        "bk": 0.05 * jax.random.normal(keys[8], (H * H,), jnp.float32),
        "root": jax.random.uniform(keys[9], (H, H), jnp.float32, -bound, bound),
        "bias": jax.random.uniform(keys[10], (H,), jnp.float32, -bound, bound),
        "w1": 0.1 * jax.random.normal(keys[11], (H, 2 * H), jnp.float32),
        "b1": 0.01 * jax.random.normal(keys[12], (2 * H,), jnp.float32),
        "w2": 0.001 * jax.random.normal(keys[13], (2 * H, 1), jnp.float32),
    }
    return h, edge_index, coord, edge_attr, smdx, smdy, params


if __name__ == "__main__":
    # Case 1: toy shapes consistent with the module (single edge tile).
    N, E, H, A = 16, 64, 32, 8
    depth = 3.0
    h, ei, coord, ea, smdx, smdy, params = _make_case(jax.random.PRNGKey(0), N, E, H, A)
    h_out, coord_out = e_gcl_gkn_forward(h, ei, coord, ea, smdx, smdy, params, depth=depth)
    jax.block_until_ready((h_out, coord_out))
    h_ref, coord_ref = _reference(h, ei, coord, ea, smdx, smdy, params, depth)
    assert jnp.allclose(h_out, h_ref, atol=2e-3, rtol=2e-3)
    assert jnp.allclose(coord_out, coord_ref, atol=2e-3, rtol=2e-3)

    # Case 2: larger graph to exercise the multi-tile edge reduction + padding path.
    N2, E2, depth2 = 64, 300, 2.0
    h2, ei2, coord2, ea2, smdx2, smdy2, params2 = _make_case(
        jax.random.PRNGKey(1), N2, E2, H, A)
    h_out2, coord_out2 = e_gcl_gkn_forward(h2, ei2, coord2, ea2, smdx2, smdy2, params2,
                                           depth=depth2, tile_edges=128)
    jax.block_until_ready((h_out2, coord_out2))
    h_ref2, coord_ref2 = _reference(h2, ei2, coord2, ea2, smdx2, smdy2, params2, depth2)
    assert jnp.allclose(h_out2, h_ref2, atol=2e-3, rtol=2e-3)
    assert jnp.allclose(coord_out2, coord_ref2, atol=2e-3, rtol=2e-3)

    print("KERNEL_OK")
</pallas_src>

<mosaic_0001>
module attributes {stable_mosaic.version = 11 : i64} {
  func.func @_egcl_kernel(%arg0: i32, %arg1: memref<16x32xf32, #tpu.memory_space<vmem>>, %arg2: memref<16x2xf32, #tpu.memory_space<vmem>>, %arg3: memref<64x9xf32, #tpu.memory_space<vmem>>, %arg4: memref<1x64xi32, #tpu.memory_space<vmem>>, %arg5: memref<64x1xi32, #tpu.memory_space<vmem>>, %arg6: memref<32x288xf32, #tpu.memory_space<vmem>>, %arg7: memref<32x32xf32, #tpu.memory_space<vmem>>, %arg8: memref<1x32xf32, #tpu.memory_space<vmem>>, %arg9: memref<32x64xf32, #tpu.memory_space<vmem>>, %arg10: memref<1x64xf32, #tpu.memory_space<vmem>>, %arg11: memref<64x1xf32, #tpu.memory_space<vmem>>, %arg12: memref<32x16xf32, #tpu.memory_space<vmem>>, %arg13: memref<16x32xf32, #tpu.memory_space<vmem>>, %arg14: memref<16x2xf32, #tpu.memory_space<vmem>>, %arg15: memref<16x34xf32, #tpu.memory_space<vmem>>) attributes {dimension_semantics = [#tpu.dimension_semantics<arbitrary>], iteration_bounds = array<i64: 1>, scalar_prefetch = 0 : i64, scratch_operands = 1 : i64, tpu.core_type = #tpu.core_type<tc>, window_params = [{pipeline_mode = #tpu.pipeline_mode<synchronous>, transform_indices = @transform_0, window_bounds = array<i64: 16, 32>}, {pipeline_mode = #tpu.pipeline_mode<synchronous>, transform_indices = @transform_1, window_bounds = array<i64: 16, 2>}, {transform_indices = @transform_2, window_bounds = array<i64: 64, 9>}, {transform_indices = @transform_3, window_bounds = array<i64: 1, 64>}, {transform_indices = @transform_4, window_bounds = array<i64: 64, 1>}, {pipeline_mode = #tpu.pipeline_mode<synchronous>, transform_indices = @transform_5, window_bounds = array<i64: 32, 288>}, {pipeline_mode = #tpu.pipeline_mode<synchronous>, transform_indices = @transform_6, window_bounds = array<i64: 32, 32>}, {pipeline_mode = #tpu.pipeline_mode<synchronous>, transform_indices = @transform_7, window_bounds = array<i64: 1, 32>}, {pipeline_mode = #tpu.pipeline_mode<synchronous>, transform_indices = @transform_8, window_bounds = array<i64: 32, 64>}, {pipeline_mode = #tpu.pipeline_mode<synchronous>, transform_indices = @transform_9, window_bounds = array<i64: 1, 64>}, {pipeline_mode = #tpu.pipeline_mode<synchronous>, transform_indices = @transform_10, window_bounds = array<i64: 64, 1>}, {pipeline_mode = #tpu.pipeline_mode<synchronous>, transform_indices = @transform_11, window_bounds = array<i64: 32, 16>}, {pipeline_mode = #tpu.pipeline_mode<synchronous>, transform_indices = @transform_12, window_bounds = array<i64: 16, 32>}, {pipeline_mode = #tpu.pipeline_mode<synchronous>, transform_indices = @transform_13, window_bounds = array<i64: 16, 2>}]} {
    %c0_i32 = arith.constant 0 : i32
    %0 = arith.cmpi eq, %arg0, %c0_i32 : i32
    %1 = arith.extui %0 : i1 to i32
    %c0_i32_0 = arith.constant 0 : i32
    %2 = arith.cmpi ne, %1, %c0_i32_0 : i32
    scf.if %2 {
      %cst_28 = arith.constant 0.000000e+00 : f32
      %82 = vector.broadcast %cst_28 : f32 to vector<16x34xf32>
      %c0_29 = arith.constant 0 : index
      %c0_30 = arith.constant 0 : index
      %83 = vector.load %arg15[%c0_29, %c0_30] : memref<16x34xf32, #tpu.memory_space<vmem>>, vector<16x34xf32>
      tpu.vector_store %arg15[%c0_29, %c0_30], %82 {strides = array<i32>} : memref<16x34xf32, #tpu.memory_space<vmem>>, vector<16x34xf32>,
    } else {
    }
    %c0 = arith.constant 0 : index
    %c0_1 = arith.constant 0 : index
    %3 = vector.load %arg1[%c0, %c0_1] : memref<16x32xf32, #tpu.memory_space<vmem>>, vector<16x32xf32>
    %c0_2 = arith.constant 0 : index
    %c0_3 = arith.constant 0 : index
    %4 = vector.load %arg3[%c0_2, %c0_3] : memref<64x9xf32, #tpu.memory_space<vmem>>, vector<64x9xf32>
    %c0_4 = arith.constant 0 : index
    %c0_5 = arith.constant 0 : index
    %5 = vector.load %arg4[%c0_4, %c0_5] : memref<1x64xi32, #tpu.memory_space<vmem>>, vector<1x64xi32>
    %c0_6 = arith.constant 0 : index
    %c0_7 = arith.constant 0 : index
    %6 = vector.load %arg5[%c0_6, %c0_7] : memref<64x1xi32, #tpu.memory_space<vmem>>, vector<64x1xi32>
    %7 = tpu.iota {dimensions = array<i32: 1>} : vector<64x16xi32>
    %8 = vector.broadcast %6 : vector<64x1xi32> to vector<64x16xi32>
    %9 = arith.cmpi eq, %7, %8 : vector<64x16xi32>
    %10 = arith.extui %9 : vector<64x16xi1> to vector<64x16xi32>
    %11 = arith.sitofp %10 : vector<64x16xi32> to vector<64x16xf32>
    %cst = arith.constant dense<0.000000e+00> : vector<64x32xf32>
    %12 = tpu.matmul %11, %3, %cst {dimension_numbers = #tpu.dot_dimension_numbers<[1], [0], [0], [1], [0, 0, 1, 1], [], []>} : vector<64x16xf32>, vector<16x32xf32>, vector<64x32xf32> -> vector<64x32xf32>
    %c0_8 = arith.constant 0 : index
    %c0_9 = arith.constant 0 : index
    %13 = vector.load %arg6[%c0_8, %c0_9] : memref<32x288xf32, #tpu.memory_space<vmem>>, vector<32x288xf32>
    %cst_10 = arith.constant dense<0.000000e+00> : vector<64x288xf32>
    %14 = tpu.matmul %12, %13, %cst_10 {dimension_numbers = #tpu.dot_dimension_numbers<[1], [0], [0], [1], [0, 0, 1, 1], [], []>} : vector<64x32xf32>, vector<32x288xf32>, vector<64x288xf32> -> vector<64x288xf32>
    %15 = vector.extract_strided_slice %4 {offsets = [0, 0], sizes = [64, 1], strides = [1, 1]} : vector<64x9xf32> to vector<64x1xf32>
    %16 = vector.extract_strided_slice %14 {offsets = [0, 0], sizes = [64, 32], strides = [1, 1]} : vector<64x288xf32> to vector<64x32xf32>
    %17 = vector.broadcast %15 : vector<64x1xf32> to vector<64x32xf32>
    %18 = arith.mulf %17, %16 : vector<64x32xf32>
    %19 = vector.extract_strided_slice %4 {offsets = [0, 1], sizes = [64, 1], strides = [1, 1]} : vector<64x9xf32> to vector<64x1xf32>
    %20 = vector.extract_strided_slice %14 {offsets = [0, 32], sizes = [64, 32], strides = [1, 1]} : vector<64x288xf32> to vector<64x32xf32>
    %21 = vector.broadcast %19 : vector<64x1xf32> to vector<64x32xf32>
    %22 = arith.mulf %21, %20 : vector<64x32xf32>
    %23 = arith.addf %18, %22 : vector<64x32xf32>
    %24 = vector.extract_strided_slice %4 {offsets = [0, 2], sizes = [64, 1], strides = [1, 1]} : vector<64x9xf32> to vector<64x1xf32>
    %25 = vector.extract_strided_slice %14 {offsets = [0, 64], sizes = [64, 32], strides = [1, 1]} : vector<64x288xf32> to vector<64x32xf32>
    %26 = vector.broadcast %24 : vector<64x1xf32> to vector<64x32xf32>
    %27 = arith.mulf %26, %25 : vector<64x32xf32>
    %28 = arith.addf %23, %27 : vector<64x32xf32>
    %29 = vector.extract_strided_slice %4 {offsets = [0, 3], sizes = [64, 1], strides = [1, 1]} : vector<64x9xf32> to vector<64x1xf32>
    %30 = vector.extract_strided_slice %14 {offsets = [0, 96], sizes = [64, 32], strides = [1, 1]} : vector<64x288xf32> to vector<64x32xf32>
    %31 = vector.broadcast %29 : vector<64x1xf32> to vector<64x32xf32>
    %32 = arith.mulf %31, %30 : vector<64x32xf32>
    %33 = arith.addf %28, %32 : vector<64x32xf32>
    %34 = vector.extract_strided_slice %4 {offsets = [0, 4], sizes = [64, 1], strides = [1, 1]} : vector<64x9xf32> to vector<64x1xf32>
    %35 = vector.extract_strided_slice %14 {offsets = [0, 128], sizes = [64, 32], strides = [1, 1]} : vector<64x288xf32> to vector<64x32xf32>
    %36 = vector.broadcast %34 : vector<64x1xf32> to vector<64x32xf32>
    %37 = arith.mulf %36, %35 : vector<64x32xf32>
    %38 = arith.addf %33, %37 : vector<64x32xf32>
    %39 = vector.extract_strided_slice %4 {offsets = [0, 5], sizes = [64, 1], strides = [1, 1]} : vector<64x9xf32> to vector<64x1xf32>
    %40 = vector.extract_strided_slice %14 {offsets = [0, 160], sizes = [64, 32], strides = [1, 1]} : vector<64x288xf32> to vector<64x32xf32>
    %41 = vector.broadcast %39 : vector<64x1xf32> to vector<64x32xf32>
    %42 = arith.mulf %41, %40 : vector<64x32xf32>
    %43 = arith.addf %38, %42 : vector<64x32xf32>
    %44 = vector.extract_strided_slice %4 {offsets = [0, 6], sizes = [64, 1], strides = [1, 1]} : vector<64x9xf32> to vector<64x1xf32>
    %45 = vector.extract_strided_slice %14 {offsets = [0, 192], sizes = [64, 32], strides = [1, 1]} : vector<64x288xf32> to vector<64x32xf32>
    %46 = vector.broadcast %44 : vector<64x1xf32> to vector<64x32xf32>
    %47 = arith.mulf %46, %45 : vector<64x32xf32>
    %48 = arith.addf %43, %47 : vector<64x32xf32>
    %49 = vector.extract_strided_slice %4 {offsets = [0, 7], sizes = [64, 1], strides = [1, 1]} : vector<64x9xf32> to vector<64x1xf32>
    %50 = vector.extract_strided_slice %14 {offsets = [0, 224], sizes = [64, 32], strides = [1, 1]} : vector<64x288xf32> to vector<64x32xf32>
    %51 = vector.broadcast %49 : vector<64x1xf32> to vector<64x32xf32>
    %52 = arith.mulf %51, %50 : vector<64x32xf32>
    %53 = arith.addf %48, %52 : vector<64x32xf32>
    %54 = vector.extract_strided_slice %4 {offsets = [0, 8], sizes = [64, 1], strides = [1, 1]} : vector<64x9xf32> to vector<64x1xf32>
    %55 = vector.extract_strided_slice %14 {offsets = [0, 256], sizes = [64, 32], strides = [1, 1]} : vector<64x288xf32> to vector<64x32xf32>
    %56 = vector.broadcast %54 : vector<64x1xf32> to vector<64x32xf32>
    %57 = arith.mulf %56, %55 : vector<64x32xf32>
    %58 = arith.addf %53, %57 : vector<64x32xf32>
    %c0_11 = arith.constant 0 : index
    %c0_12 = arith.constant 0 : index
    %59 = vector.load %arg9[%c0_11, %c0_12] : memref<32x64xf32, #tpu.memory_space<vmem>>, vector<32x64xf32>
    %cst_13 = arith.constant dense<0.000000e+00> : vector<64x64xf32>
    %60 = tpu.matmul %58, %59, %cst_13 {dimension_numbers = #tpu.dot_dimension_numbers<[1], [0], [0], [1], [0, 0, 1, 1], [], []>} : vector<64x32xf32>, vector<32x64xf32>, vector<64x64xf32> -> vector<64x64xf32>
    %c0_14 = arith.constant 0 : index
    %c0_15 = arith.constant 0 : index
    %61 = vector.load %arg10[%c0_14, %c0_15] : memref<1x64xf32, #tpu.memory_space<vmem>>, vector<1x64xf32>
    %62 = vector.broadcast %61 : vector<1x64xf32> to vector<64x64xf32>
    %63 = arith.addf %60, %62 : vector<64x64xf32>
    %cst_16 = arith.constant 0.000000e+00 : f32
    %64 = vector.broadcast %cst_16 : f32 to vector<64x64xf32>
    %65 = arith.maximumf %63, %64 : vector<64x64xf32>
    %c0_17 = arith.constant 0 : index
    %c0_18 = arith.constant 0 : index
    %66 = vector.load %arg11[%c0_17, %c0_18] : memref<64x1xf32, #tpu.memory_space<vmem>>, vector<64x1xf32>
    %cst_19 = arith.constant dense<0.000000e+00> : vector<64x1xf32>
    %67 = tpu.matmul %65, %66, %cst_19 {dimension_numbers = #tpu.dot_dimension_numbers<[1], [0], [0], [1], [0, 0, 1, 1], [], []>} : vector<64x64xf32>, vector<64x1xf32>, vector<64x1xf32> -> vector<64x1xf32>
    %68 = tpu.iota {dimensions = array<i32: 0>} : vector<16x64xi32>
    %69 = vector.broadcast %5 : vector<1x64xi32> to vector<16x64xi32>
    %70 = arith.cmpi eq, %68, %69 : vector<16x64xi32>
    %71 = arith.extui %70 : vector<16x64xi1> to vector<16x64xi32>
    %72 = arith.sitofp %71 : vector<16x64xi32> to vector<16x64xf32>
    %cst_20 = arith.constant 1.000000e+00 : f32
    %73 = vector.broadcast %cst_20 : f32 to vector<64x1xf32>
    %74 = tpu.concatenate %58, %67, %73 in 1 : vector<64x32xf32>, vector<64x1xf32>, vector<64x1xf32> -> vector<64x34xf32>
    %c0_21 = arith.constant 0 : index
    %c0_22 = arith.constant 0 : index
    %75 = vector.load %arg15[%c0_21, %c0_22] : memref<16x34xf32, #tpu.memory_space<vmem>>, vector<16x34xf32>
    %cst_23 = arith.constant dense<0.000000e+00> : vector<16x34xf32>
    %76 = tpu.matmul %72, %74, %cst_23 {dimension_numbers = #tpu.dot_dimension_numbers<[1], [0], [0], [1], [0, 0, 1, 1], [], []>} : vector<16x64xf32>, vector<64x34xf32>, vector<16x34xf32> -> vector<16x34xf32>
    %77 = arith.addf %75, %76 : vector<16x34xf32>
    %c0_24 = arith.constant 0 : index
    %c0_25 = arith.constant 0 : index
    %78 = vector.load %arg15[%c0_24, %c0_25] : memref<16x34xf32, #tpu.memory_space<vmem>>, vector<16x34xf32>
    tpu.vector_store %arg15[%c0_24, %c0_25], %77 {strides = array<i32>} : memref<16x34xf32, #tpu.memory_space<vmem>>, vector<16x34xf32>,
    %c0_i32_26 = arith.constant 0 : i32
    %79 = arith.cmpi eq, %arg0, %c0_i32_26 : i32
    %80 = arith.extui %79 : i1 to i32
    %c0_i32_27 = arith.constant 0 : i32
    %81 = arith.cmpi ne, %80, %c0_i32_27 : i32
    scf.if %81 {
      %c0_28 = arith.constant 0 : index
      %c0_29 = arith.constant 0 : index
      %82 = vector.load %arg15[%c0_28, %c0_29] : memref<16x34xf32, #tpu.memory_space<vmem>>, vector<16x34xf32>
      %83 = vector.extract_strided_slice %82 {offsets = [0, 33], sizes = [16, 1], strides = [1, 1]} : vector<16x34xf32> to vector<16x1xf32>
      %cst_30 = arith.constant 1.000000e+00 : f32
      %84 = vector.broadcast %cst_30 : f32 to vector<16x1xf32>
      %85 = arith.maximumf %83, %84 : vector<16x1xf32>
      %86 = tpu.reciprocal %85 {approx = true} : vector<16x1xf32> -> vector<16x1xf32>
      %87 = vector.extract_strided_slice %82 {offsets = [0, 0], sizes = [16, 32], strides = [1, 1]} : vector<16x34xf32> to vector<16x32xf32>
      %88 = vector.broadcast %86 : vector<16x1xf32> to vector<16x32xf32>
      %89 = arith.mulf %87, %88 : vector<16x32xf32>
      %90 = vector.extract_strided_slice %82 {offsets = [0, 32], sizes = [16, 1], strides = [1, 1]} : vector<16x34xf32> to vector<16x1xf32>
      %91 = arith.mulf %90, %86 : vector<16x1xf32>
      %c0_31 = arith.constant 0 : index
      %c0_32 = arith.constant 0 : index
      %92 = vector.load %arg7[%c0_31, %c0_32] : memref<32x32xf32, #tpu.memory_space<vmem>>, vector<32x32xf32>
      %cst_33 = arith.constant dense<0.000000e+00> : vector<16x32xf32>
      %93 = tpu.matmul %3, %92, %cst_33 {dimension_numbers = #tpu.dot_dimension_numbers<[1], [0], [0], [1], [0, 0, 1, 1], [], []>} : vector<16x32xf32>, vector<32x32xf32>, vector<16x32xf32> -> vector<16x32xf32>
      %94 = arith.addf %89, %93 : vector<16x32xf32>
      %c0_34 = arith.constant 0 : index
      %c0_35 = arith.constant 0 : index
      %95 = vector.load %arg8[%c0_34, %c0_35] : memref<1x32xf32, #tpu.memory_space<vmem>>, vector<1x32xf32>
      %96 = vector.broadcast %95 : vector<1x32xf32> to vector<16x32xf32>
      %97 = arith.addf %94, %96 : vector<16x32xf32>
      %cst_36 = arith.constant 0.000000e+00 : f32
      %98 = vector.broadcast %cst_36 : f32 to vector<16x32xf32>
      %99 = arith.maximumf %97, %98 : vector<16x32xf32>
      %cst_37 = arith.constant 0.333333343 : f32
      %100 = vector.broadcast %cst_37 : f32 to vector<16x32xf32>
      %101 = arith.mulf %99, %100 : vector<16x32xf32>
      %102 = arith.addf %3, %101 : vector<16x32xf32>
      %c0_38 = arith.constant 0 : index
      %c0_39 = arith.constant 0 : index
      %103 = vector.load %arg13[%c0_38, %c0_39] : memref<16x32xf32, #tpu.memory_space<vmem>>, vector<16x32xf32>
      tpu.vector_store %arg13[%c0_38, %c0_39], %102 {strides = array<i32>} : memref<16x32xf32, #tpu.memory_space<vmem>>, vector<16x32xf32>,
      %c0_40 = arith.constant 0 : index
      %c0_41 = arith.constant 0 : index
      %104 = vector.load %arg12[%c0_40, %c0_41] : memref<32x16xf32, #tpu.memory_space<vmem>>, vector<32x16xf32>
      %cst_42 = arith.constant dense<0.000000e+00> : vector<32x1xf32>
      %105 = tpu.matmul %104, %91, %cst_42 {dimension_numbers = #tpu.dot_dimension_numbers<[1], [0], [0], [1], [0, 0, 1, 1], [], []>} : vector<32x16xf32>, vector<16x1xf32>, vector<32x1xf32> -> vector<32x1xf32>
      %c0_43 = arith.constant 0 : index
      %c0_44 = arith.constant 0 : index
      %106 = vector.load %arg2[%c0_43, %c0_44] : memref<16x2xf32, #tpu.memory_space<vmem>>, vector<16x2xf32>
      %107 = vector.extract_strided_slice %105 {offsets = [0, 0], sizes = [16, 1], strides = [1, 1]} : vector<32x1xf32> to vector<16x1xf32>
      %108 = vector.extract_strided_slice %105 {offsets = [16, 0], sizes = [16, 1], strides = [1, 1]} : vector<32x1xf32> to vector<16x1xf32>
      %109 = tpu.concatenate %107, %108 in 1 : vector<16x1xf32>, vector<16x1xf32> -> vector<16x2xf32>
      %110 = arith.addf %106, %109 : vector<16x2xf32>
      %c0_45 = arith.constant 0 : index
      %c0_46 = arith.constant 0 : index
      %111 = vector.load %arg14[%c0_45, %c0_46] : memref<16x2xf32, #tpu.memory_space<vmem>>, vector<16x2xf32>
      tpu.vector_store %arg14[%c0_45, %c0_46], %110 {strides = array<i32>} : memref<16x2xf32, #tpu.memory_space<vmem>>, vector<16x2xf32>,
    } else {
    }
    return
  }
  func.func @transform_0(%arg0: i32) -> (i32, i32) {
    %c0_i32 = arith.constant 0 : i32
    %c0_i32_0 = arith.constant 0 : i32
    %c0_i32_1 = arith.constant 0 : i32
    return %c0_i32, %c0_i32_0 : i32, i32
  }
  func.func @transform_1(%arg0: i32) -> (i32, i32) {
    %c0_i32 = arith.constant 0 : i32
    %c0_i32_0 = arith.constant 0 : i32
    %c0_i32_1 = arith.constant 0 : i32
    return %c0_i32, %c0_i32_0 : i32, i32
  }
  func.func @transform_2(%arg0: i32) -> (i32, i32) {
    %c0_i32 = arith.constant 0 : i32
    %c0_i32_0 = arith.constant 0 : i32
    return %arg0, %c0_i32 : i32, i32
  }
  func.func @transform_3(%arg0: i32) -> (i32, i32) {
    %c0_i32 = arith.constant 0 : i32
    %c0_i32_0 = arith.constant 0 : i32
    return %c0_i32, %arg0 : i32, i32
  }
  func.func @transform_4(%arg0: i32) -> (i32, i32) {
    %c0_i32 = arith.constant 0 : i32
    %c0_i32_0 = arith.constant 0 : i32
    return %arg0, %c0_i32 : i32, i32
  }
  func.func @transform_5(%arg0: i32) -> (i32, i32) {
    %c0_i32 = arith.constant 0 : i32
    %c0_i32_0 = arith.constant 0 : i32
    %c0_i32_1 = arith.constant 0 : i32
    return %c0_i32, %c0_i32_0 : i32, i32
  }
  func.func @transform_6(%arg0: i32) -> (i32, i32) {
    %c0_i32 = arith.constant 0 : i32
    %c0_i32_0 = arith.constant 0 : i32
    %c0_i32_1 = arith.constant 0 : i32
    return %c0_i32, %c0_i32_0 : i32, i32
  }
  func.func @transform_7(%arg0: i32) -> (i32, i32) {
    %c0_i32 = arith.constant 0 : i32
    %c0_i32_0 = arith.constant 0 : i32
    %c0_i32_1 = arith.constant 0 : i32
    return %c0_i32, %c0_i32_0 : i32, i32
  }
  func.func @transform_8(%arg0: i32) -> (i32, i32) {
    %c0_i32 = arith.constant 0 : i32
    %c0_i32_0 = arith.constant 0 : i32
    %c0_i32_1 = arith.constant 0 : i32
    return %c0_i32, %c0_i32_0 : i32, i32
  }
  func.func @transform_9(%arg0: i32) -> (i32, i32) {
    %c0_i32 = arith.constant 0 : i32
    %c0_i32_0 = arith.constant 0 : i32
    %c0_i32_1 = arith.constant 0 : i32
    return %c0_i32, %c0_i32_0 : i32, i32
  }
  func.func @transform_10(%arg0: i32) -> (i32, i32) {
    %c0_i32 = arith.constant 0 : i32
    %c0_i32_0 = arith.constant 0 : i32
    %c0_i32_1 = arith.constant 0 : i32
    return %c0_i32, %c0_i32_0 : i32, i32
  }
  func.func @transform_11(%arg0: i32) -> (i32, i32) {
    %c0_i32 = arith.constant 0 : i32
    %c0_i32_0 = arith.constant 0 : i32
    %c0_i32_1 = arith.constant 0 : i32
    return %c0_i32, %c0_i32_0 : i32, i32
  }
  func.func @transform_12(%arg0: i32) -> (i32, i32) {
    %c0_i32 = arith.constant 0 : i32
    %c0_i32_0 = arith.constant 0 : i32
    %c0_i32_1 = arith.constant 0 : i32
    return %c0_i32, %c0_i32_0 : i32, i32
  }
  func.func @transform_13(%arg0: i32) -> (i32, i32) {
    %c0_i32 = arith.constant 0 : i32
    %c0_i32_0 = arith.constant 0 : i32
    %c0_i32_1 = arith.constant 0 : i32
    return %c0_i32, %c0_i32_0 : i32, i32
  }
}

</mosaic_0001>

<bundles_post_ra>
// kernel: tpu_custom_call.1
= control target key start
LH: loop header
LB: loop body
LE: loop exit
PB: predicated region body
PF: predicated region fallthrough
CT: control target
= control target key end

     0   :  { %v2192_v2 = vmov 0   ;;  %v2193_v7 = vmov 0.0   ;;  %s3042_s0 = inlined_call_operand.vmem [shape: f32[16,32], index: 0, kind: input, shape index: {}]   ;;  %s3043_s1 = inlined_call_operand.vmem [shape: f32[16,2], index: 1, kind: input, shape index: {}]   ;;  %s3044_s2 = inlined_call_operand.vmem [shape: f32[64,9], index: 2, kind: input, shape index: {}]   ;;  %s3045_s3 = inlined_call_operand.vmem [shape: s32[1,64], index: 3, kind: input, shape index: {}]   ;;  %s3046_s4 = inlined_call_operand.vmem [shape: s32[64,1], index: 4, kind: input, shape index: {}]   ;;  %s3047_s5 = inlined_call_operand.vmem [shape: f32[32,288], index: 5, kind: input, shape index: {}]   ;;  %s3048_s6 = inlined_call_operand.vmem [shape: f32[32,32], index: 6, kind: input, shape index: {}]   ;;  %s3049_s7 = inlined_call_operand.vmem [shape: f32[1,32], index: 7, kind: input, shape index: {}]   ;;  %s3050_s8 = inlined_call_operand.vmem [shape: f32[32,64], index: 8, kind: input, shape index: {}]   ;;  %s3051_s9 = inlined_call_operand.vmem [shape: f32[1,64], index: 9, kind: input, shape index: {}]   ;;  %s3052_s10 = inlined_call_operand.vmem [shape: f32[64,1], index: 10, kind: input, shape index: {}]   ;;  %s3053_s11 = inlined_call_operand.vmem [shape: f32[32,16], index: 11, kind: input, shape index: {}]   ;;  %s3054_s12 = inlined_call_operand.hbm [shape: f32[16,32], index: 12, kind: output, shape index: {0}]   ;;  %s3055_s13 = inlined_call_operand.vmem [shape: f32[16,2], index: 13, kind: output, shape index: {1}]  }
   0x1   :  { %v62_v0 = vld [vmem:[%s3046_s4] sm:$0xff]  ;;  %v64_v1 = vld [vmem:[%s3046_s4 + $0x10] sm:$0xff]  ;;  %2121 = vset.pattern.permute.xlu0 %v2192_v2  ;;  %2122 = vset.pattern.permute.xlu1 %v2192_v2  ;;  %v63_v3 = vld [vmem:[%s3046_s4 + $0x8] sm:$0xff] }
   0x2   :  { %73 = vperm.xlu0 %2121, %v62_v0   ;;  %79 = vperm.xlu1 %2122, %v64_v1   ;;  %v52_v4 = vld [vmem:[%s3042_s0 + $0x8] sm:$0xff]  ;;  %v65_v5 = vld [vmem:[%s3046_s4 + $0x18] sm:$0xff]  ;;  %v51_v6 = vld [vmem:[%s3042_s0] sm:$0xff] }
   0x3   :  { %1978 = vmatprep.subr.mxu0 %v52_v4  ;;  %351 = vmatprep.mubr.f32.mxu1 %v2193_v7 }
   0x4   :  { %19 = vsyncpa [#allocation4], 0  ;;  %1979 = vmatpush3.msra.mxu0 %v52_v4  ;;  %v66_v8 = vld [vmem:[%s3046_s4 + $0x20] sm:$0xff]  ;;  %v67_v9 = vld [vmem:[%s3046_s4 + $0x28] sm:$0xff]  ;;  %v2194_v13 = vmov 1   ;;  %v2195_v14 = vmov 2   ;;  %v70_v33 = vlaneseq }
   0x5   :  { %1980 = vmatprep.subr.mxu0 %v51_v6  ;;  %v68_v10 = vld [vmem:[%s3046_s4 + $0x30] sm:$0xff]  ;;  %v69_v11 = vld [vmem:[%s3046_s4 + $0x38] sm:$0xff]  ;;  %v2317_v12 = vld [vmem:[%s3044_s2 + $0x8] sm:$0xff]  ;;  %v2196_v25 = vmov 3   ;;  %v2197_v27 = vmov 6   ;;  %v2198_v31 = vmov 5  }
   0x6   :  { %76 = vperm.xlu0 %2121, %v63_v3   ;;  %82 = vperm.xlu1 %2122, %v65_v5   ;;  %v260_v15 = vld [vmem:[%s3047_s5 + $0x50] sm:$0xff]  ;;  %v259_v16 = vld [vmem:[%s3047_s5 + $0x48] sm:$0xff]  ;;  %v2332_v17 = vld [vmem:[%s3047_s5 + $0x58] sm:$0xff]  ;;  %v2199_v32 = vmov 7   ;;  %v71_v34 = vand.u32 127, %v70_v33  ;;  %vm120_vm0 = vcmask 130048  }
   0x7   :  { %1981 = vmatpush3.msra.mxu0 %v51_v6  ;;  %v257_v18 = vld [vmem:[%s3047_s5 + $0x38] sm:$0xff]  ;;  %311 = vmatprep.subr.mxu1 %v260_v15  ;;  %v2341_v19 = vld [vmem:[%s3044_s2] sm:$0xff]  ;;  %v256_v20 = vld [vmem:[%s3047_s5 + $0x30] sm:$0xff]  ;;  %v2200_v56 = vmov 4   ;;  %v2201_v57 = vmov 8   ;;  %vm262_vm9 = vcmask 261120  }
   0x8   :  { %1994 = vmatprep.subr.mxu0 %v2332_v17  ;;  %312 = vmatpush1.msra.mxu1 %v259_v16  ;;  %v2349_v21 = vld [vmem:[%s3044_s2 + $0x18] sm:$0xff]  ;;  %v254_v22 = vld [vmem:[%s3047_s5 + $0x20] sm:$0xff]  ;;  %v2363_v24 = vld [vmem:[%s3044_s2 + $0x10] sm:$0xff]  ;;  %s2203_s14 = smov 96   ;;  %s2204_s4 = smov 32   ;;  %vm1285_vm10 = vcmask 523264  }
   0x9   :  { %313 = vmatprep.subr.mxu1 %v257_v18  ;;  %v253_v23 = vld [vmem:[%s3047_s5 + $0x18] sm:$0xff]  ;;  %v2373_v26 = vld [vmem:[%s3044_s2 + $0x30] sm:$0xff]  ;;  %v2385_v28 = vld [vmem:[%s3044_s2 + $0x20] sm:$0xff]  ;;  %vm48_vm13 = vcmask 277504   ;;  %vm1468_vm14 = vcmask 269312  }
   0xa   :  { %85 = vperm.xlu0 %2121, %v66_v8   ;;  %88 = vperm.xlu1 %2122, %v67_v9   ;;  %v2395_v29 = vld [vmem:[%s3044_s2 + $0x38] sm:$0xff]  ;;  %v2401_v30 = vld [vmem:[%s3044_s2 + $0x28] sm:$0xff]  ;;  %v258_v42 = vld [vmem:[%s3047_s5 + $0x40] sm:$0xff]  ;;  %50 = vst.msk [vmem:[#allocation2 + $0x8] sm:$0xff] %vm48_vm13, %v2193_v7 }
   0xb   :  { %314 = vmatpush1.msra.mxu1 %v256_v20  ;;  %v255_v52 = vld [vmem:[%s3047_s5 + $0x28] sm:$0xff]  ;;  %v250_v54 = vld [vmem:[%s3047_s5] sm:$0xff]  ;;  %v252_v55 = vld [vmem:[%s3047_s5 + $0x10] sm:$0xff]  ;;  %49 = vst.msk [vmem:[#allocation2] sm:$0xff] %vm48_vm13, %v2193_v7 }
   0xc   :  { %315 = vmatprep.subr.mxu1 %v254_v22  ;;  %v251_v53 = vld [vmem:[%s3047_s5 + $0x8] sm:$0xff]  ;;  %s2202_s5 = smov 64  }
   0xd   :  { %316 = vmatpush1.msra.mxu1 %v253_v23 }
   0xe   :  { %91 = vperm.xlu0 %2121, %v68_v10   ;;  %94 = vperm.xlu1 %2122, %v69_v11  }
   0xf   :  { %317 = vmatprep.subr.mxu1 %v251_v53 }
  0x10   :  { %318 = vmatpush1.msra.mxu1 %v250_v54  ;;  %v1131_v54 = vld [vmem:[%s3050_s8 + $0x10] sm:$0xff] }
  0x12   :  { %2123 = vset.pattern.permute.xlu1 %v2194_v13  ;;  %2125 = vset.pattern.permute.xlu0 %v2195_v14 }
  0x13   :  { %558 = vperm.xlu1 %2123, %v2317_v12   ;;  %638 = vperm.xlu0 %2125, %v2317_v12  }
  0x17   :  { %2124 = vset.pattern.permute.xlu1 %v2195_v14  ;;  %646 = vperm.xlu0 %2125, %v2349_v21  }
  0x18   :  { %634 = vperm.xlu1 %2124, %v2341_v19  }
  0x1b   :  { %2129 = vset.pattern.permute.xlu0 %v2194_v13 }
  0x1c   :  { %2126 = vset.pattern.permute.xlu1 %v2194_v13  ;;  %554 = vperm.xlu0 %2129, %v2341_v19  }
  0x1d   :  { %562 = vperm.xlu1 %2126, %v2363_v24  }
  0x20   :  { %566 = vperm.xlu0 %2129, %v2349_v21  }
  0x21   :  { %2127 = vset.pattern.permute.xlu1 %v2196_v25 }
  0x22   :  { %714 = vperm.xlu1 %2127, %v2341_v19  }
  0x24   :  { %578 = vperm.xlu0 %2129, %v2373_v26  }
  0x26   :  { %718 = vperm.xlu1 %2127, %v2317_v12  }
  0x28   :  { %2136 = vset.pattern.permute.xlu0 %v2197_v27 }
  0x29   :  { %922 = vperm.xlu0 %2136, %v2341_v19  }
  0x2a   :  { %2128 = vset.pattern.permute.xlu1 %v2195_v14 }
  0x2b   :  { %642 = vperm.xlu1 %2128, %v2363_v24  }
  0x2d   :  { %930 = vperm.xlu0 %2136, %v2363_v24  }
  0x2f   :  { %2130 = vset.pattern.permute.xlu1 %v2194_v13 }
  0x30   :  { %570 = vperm.xlu1 %2130, %v2385_v28  }
  0x31   :  { %2144 = vset.pattern.permute.xlu0 %v2196_v25 }
  0x32   :  { %738 = vperm.xlu0 %2144, %v2373_v26  }
  0x34   :  { %2131 = vset.pattern.permute.xlu1 %v2196_v25 }
  0x35   :  { %722 = vperm.xlu1 %2131, %v2363_v24  }
  0x36   :  { %742 = vperm.xlu0 %2144, %v2395_v29  }
  0x39   :  { %2132 = vset.pattern.permute.xlu1 %v2194_v13 }
  0x3a   :  { %574 = vperm.xlu1 %2132, %v2401_v30   ;;  %2147 = vset.pattern.permute.xlu0 %v2198_v31 }
  0x3b   :  { %842 = vperm.xlu0 %2147, %v2341_v19  }
  0x3e   :  { %2133 = vset.pattern.permute.xlu1 %v2196_v25 }
  0x3f   :  { %726 = vperm.xlu1 %2133, %v2349_v21   ;;  %846 = vperm.xlu0 %2147, %v2317_v12  }
  0x43   :  { %2134 = vset.pattern.permute.xlu1 %v2195_v14  ;;  %854 = vperm.xlu0 %2147, %v2349_v21  }
  0x44   :  { %650 = vperm.xlu1 %2134, %v2385_v28  }
  0x47   :  { %866 = vperm.xlu0 %2147, %v2373_v26  }
  0x48   :  { %654 = vperm.xlu1 %2134, %v2401_v30  }
  0x4b   :  { %2150 = vset.pattern.permute.xlu0 %v2199_v32 }
  0x4c   :  { %2135 = vset.pattern.permute.xlu1 %v2197_v27  ;;  %1002 = vperm.xlu0 %2150, %v2341_v19  }
  0x4d   :  { %926 = vperm.xlu1 %2135, %v2317_v12  }
  0x50   :  { %1014 = vperm.xlu0 %2150, %v2349_v21  }
  0x51   :  { %2137 = vset.pattern.permute.xlu1 %v2196_v25 }
  0x52   :  { %730 = vperm.xlu1 %2137, %v2385_v28  }
  0x54   :  { %1022 = vperm.xlu0 %2150, %v2401_v30  }
  0x56   :  { %2138 = vset.pattern.permute.xlu1 %v2198_v31 }
  0x57   :  { %850 = vperm.xlu1 %2138, %v2363_v24  }
  0x58   :  { %1026 = vperm.xlu0 %2150, %v2373_v26  }
  0x5b   :  { %2139 = vset.pattern.permute.xlu1 %v2194_v13 }
  0x5c   :  { %582 = vperm.xlu1 %2139, %v2395_v29   ;;  %2155 = vset.pattern.permute.xlu0 %v2192_v2 }
  0x5d   :  { %507 = vperm.xlu0 %2155, %v2341_v19  }
  0x60   :  { %2140 = vset.pattern.permute.xlu1 %v2196_v25 }
  0x61   :  { %734 = vperm.xlu1 %2140, %v2401_v30   ;;  %522 = vperm.xlu0 %2155, %v2349_v21  }
  0x65   :  { %2141 = vset.pattern.permute.xlu1 %v2199_v32  ;;  %527 = vperm.xlu0 %2155, %v2385_v28  }
  0x66   :  { %1006 = vperm.xlu1 %2141, %v2317_v12  }
  0x69   :  { %532 = vperm.xlu0 %2155, %v2401_v30  }
  0x6a   :  { %2142 = vset.pattern.permute.xlu1 %v2195_v14 }
  0x6b   :  { %658 = vperm.xlu1 %2142, %v2373_v26  }
  0x6d   :  { %2158 = vset.pattern.permute.xlu0 %v2200_v56 }
  0x6e   :  { %806 = vperm.xlu0 %2158, %v2349_v21  }
  0x6f   :  { %662 = vperm.xlu1 %2142, %v2395_v29  }
  0x72   :  { %810 = vperm.xlu0 %2158, %v2385_v28  }
  0x73   :  { %2143 = vset.pattern.permute.xlu1 %v2197_v27 }
  0x74   :  { %934 = vperm.xlu1 %2143, %v2349_v21  }
  0x76   :  { %814 = vperm.xlu0 %2158, %v2401_v30  }
  0x78   :  { %2145 = vset.pattern.permute.xlu1 %v2198_v31 }
  0x79   :  { %858 = vperm.xlu1 %2145, %v2385_v28  }
  0x7a   :  { %818 = vperm.xlu0 %2158, %v2373_v26  }
  0x7d   :  { %v74_v35 = vpop.permute.xlu0 %73  ;;  %v80_v36 = vpop.permute.xlu1 %79  ;;  %2146 = vset.pattern.permute.xlu1 %v2199_v32 }
  0x7e   :  { %vm96_vm1 = vcmp.eq.s32.totalorder %v71_v34, %v74_v35  ;;  %1010 = vperm.xlu1 %2146, %v2363_v24   ;;  %vm98_vm2 = vcmp.eq.s32.totalorder %v71_v34, %v80_v36  ;;  %822 = vperm.xlu0 %2158, %v2395_v29  }
  0x7f   :  { %v1845_v37 = vsel %vm96_vm1, 1.0, %v2193_v7  ;;  %v1847_v40 = vsel %vm98_vm2, 1.0, %v2193_v7 }
  0x80   :  { %1982 = vmatprep.mubr.msk.f32.mxu0 %vm120_vm0, %v1845_v37 }
  0x81   :  { %v77_v38 = vpop.permute.xlu0 %76  ;;  %v83_v39 = vpop.permute.xlu1 %82 }
  0x82   :  { %vm97_vm3 = vcmp.eq.s32.totalorder %v71_v34, %v77_v38  ;;  %vm99_vm4 = vcmp.eq.s32.totalorder %v71_v34, %v83_v39  ;;  %2148 = vset.pattern.permute.xlu1 %v2198_v31  ;;  %2161 = vset.pattern.permute.xlu0 %v2201_v57 }
  0x83   :  { %v1846_v41 = vsel %vm97_vm3, 1.0, %v2193_v7  ;;  %862 = vperm.xlu1 %2148, %v2401_v30   ;;  %v1848_v43 = vsel %vm99_vm4, 1.0, %v2193_v7  ;;  %1086 = vperm.xlu0 %2161, %v2317_v12  }
  0x84   :  { %1983 = vmatmul.mubr.msk.f32.vlgmr.msra.gmra.mxu0 %vm120_vm0, %v1846_v41 }
  0x85   :  { %v86_v44 = vpop.permute.xlu0 %85  ;;  %1985 = vmatprep.mubr.msk.f32.mxu0 %vm120_vm0, %v1847_v40  ;;  %v89_v45 = vpop.permute.xlu1 %88  ;;  %1995 = vmatpush3.msra.mxu0 %v2332_v17 }
  0x86   :  { %vm100_vm5 = vcmp.eq.s32.totalorder %v71_v34, %v86_v44  ;;  %vm101_vm6 = vcmp.eq.s32.totalorder %v71_v34, %v89_v45  ;;  %1996 = vmatprep.subr.mxu0 %v258_v42 }
  0x87   :  { %v1849_v46 = vsel %vm100_vm5, 1.0, %v2193_v7  ;;  %1997 = vmatpush3.msra.mxu0 %v258_v42  ;;  %2149 = vset.pattern.permute.xlu1 %v2197_v27  ;;  %v1850_v47 = vsel %vm101_vm6, 1.0, %v2193_v7 }
  0x88   :  { %1986 = vmatmul.mubr.msk.f32.gmra.mxu0 %vm120_vm0, %v1848_v43  ;;  %938 = vperm.xlu1 %2149, %v2385_v28  }
  0x89   :  { %v92_v48 = vpop.permute.xlu0 %91  ;;  %1988 = vmatprep.mubr.msk.f32.mxu0 %vm120_vm0, %v1849_v46  ;;  %v95_v49 = vpop.permute.xlu1 %94  ;;  %1998 = vmatprep.subr.mxu0 %v255_v52 }
  0x8a   :  { %vm102_vm7 = vcmp.eq.s32.totalorder %v71_v34, %v92_v48  ;;  %vm103_vm8 = vcmp.eq.s32.totalorder %v71_v34, %v95_v49  ;;  %1999 = vmatpush3.msra.mxu0 %v255_v52  ;;  %1098 = vperm.xlu0 %2161, %v2385_v28   ;;  %v1132_v52 = vld [vmem:[%s3050_s8 + $0x18] sm:$0xff] }
  0x8b   :  { %v1851_v50 = vsel %vm102_vm7, 1.0, %v2193_v7  ;;  %v1852_v51 = vsel %vm103_vm8, 1.0, %v2193_v7  ;;  %2000 = vmatprep.subr.mxu0 %v252_v55 }
  0x8c   :  { %1989 = vmatmul.mubr.msk.f32.gmra.mxu0 %vm120_vm0, %v1850_v47  ;;  %942 = vperm.xlu1 %2149, %v2401_v30  }
  0x8d   :  { %1991 = vmatprep.mubr.msk.f32.mxu0 %vm120_vm0, %v1851_v50  ;;  %2001 = vmatpush3.msra.mxu0 %v252_v55 }
  0x8e   :  { %1110 = vperm.xlu0 %2161, %v2395_v29   ;;  %v639_v15 = vpop.permute.xlu0 %638  ;;  %2014 = vmatprep.subr.mxu0 %v1132_v52 }
  0x90   :  { %1992 = vmatmul.mubr.msk.f32.gmra.mxu0 %vm120_vm0, %v1852_v51  ;;  %2151 = vset.pattern.permute.xlu1 %v2199_v32 }
  0x91   :  { %1018 = vperm.xlu1 %2151, %v2385_v28  }
  0x92   :  { %v2553_v17 = vpop.permute.xlu0 %646 }
  0x95   :  { %2152 = vset.pattern.permute.xlu1 %v2198_v31 }
  0x96   :  { %870 = vperm.xlu1 %2152, %v2395_v29  }
  0x9a   :  { %2153 = vset.pattern.permute.xlu1 %v2197_v27 }
  0x9b   :  { %946 = vperm.xlu1 %2153, %v2373_v26  }
  0x9f   :  { %950 = vperm.xlu1 %2153, %v2395_v29  }
  0xa3   :  { %2154 = vset.pattern.permute.xlu1 %v2199_v32 }
  0xa4   :  { %1030 = vperm.xlu1 %2154, %v2395_v29  }
  0xa8   :  { %2156 = vset.pattern.permute.xlu1 %v2192_v2 }
  0xa9   :  { %512 = vperm.xlu1 %2156, %v2317_v12  }
  0xad   :  { %517 = vperm.xlu1 %2156, %v2363_v24  }
  0xb1   :  { %2157 = vset.pattern.permute.xlu1 %v2200_v56 }
  0xb2   :  { %794 = vperm.xlu1 %2157, %v2341_v19  }
  0xb6   :  { %798 = vperm.xlu1 %2157, %v2317_v12  }
  0xba   :  { %802 = vperm.xlu1 %2157, %v2363_v24  }
  0xbe   :  { %2159 = vset.pattern.permute.xlu1 %v2192_v2  ;;  %v559_v2 = vpop.permute.xlu1 %558 }
  0xbf   :  { %537 = vperm.xlu1 %2159, %v2373_v26  }
  0xc2   :  { %v635_v3 = vpop.permute.xlu1 %634 }
  0xc3   :  { %542 = vperm.xlu1 %2159, %v2395_v29  }
  0xc6   :  { %v2535_v4 = vpop.permute.xlu1 %562 }
  0xc7   :  { %2160 = vset.pattern.permute.xlu1 %v2201_v57 }
  0xc8   :  { %1082 = vperm.xlu1 %2160, %v2341_v19   ;;  %v555_v19 = vpop.permute.xlu0 %554 }
  0xca   :  { %v715_v5 = vpop.permute.xlu1 %714 }
  0xcc   :  { %1090 = vperm.xlu1 %2160, %v2363_v24  }
  0xce   :  { %v2537_v6 = vpop.permute.xlu1 %718 }
  0xd0   :  { %1094 = vperm.xlu1 %2160, %v2349_v21   ;;  %v2559_v21 = vpop.permute.xlu0 %566 }
  0xd2   :  { %v2539_v8 = vpop.permute.xlu1 %642 }
  0xd4   :  { %1102 = vperm.xlu1 %2160, %v2401_v30   ;;  %v2563_v23 = vpop.permute.xlu0 %578 }
  0xd6   :  { %v2541_v9 = vpop.permute.xlu1 %570 }
  0xd8   :  { %1106 = vperm.xlu1 %2160, %v2373_v26   ;;  %v923_v25 = vpop.permute.xlu0 %922 }
  0xda   :  { %v2543_v10 = vpop.permute.xlu1 %722 }
  0xdc   :  { %v2567_v27 = vpop.permute.xlu0 %930 }
  0xde   :  { %v2545_v11 = vpop.permute.xlu1 %574 }
  0xe0   :  { %v2571_v29 = vpop.permute.xlu0 %738 }
  0xe2   :  { %v2547_v12 = vpop.permute.xlu1 %726 }
  0xe4   :  { %v2575_v31 = vpop.permute.xlu0 %742 }
  0xe6   :  { %v2549_v13 = vpop.permute.xlu1 %650 }
  0xe8   :  { %v843_v34 = vpop.permute.xlu0 %842 }
  0xea   :  { %v2551_v14 = vpop.permute.xlu1 %654 }
  0xec   :  { %v847_v36 = vpop.permute.xlu0 %846 }
  0xee   :  { %v927_v16 = vpop.permute.xlu1 %926 }
  0xf0   :  { %v2583_v38 = vpop.permute.xlu0 %854 }
  0xf2   :  { %v2555_v18 = vpop.permute.xlu1 %730 }
  0xf4   :  { %v2591_v43 = vpop.permute.xlu0 %866 }
  0xf6   :  { %v2557_v20 = vpop.permute.xlu1 %850 }
  0xf8   :  { %v1003_v48 = vpop.permute.xlu0 %1002 }
  0xfa   :  { %v2561_v22 = vpop.permute.xlu1 %582 }
  0xfe   :  { %v2565_v24 = vpop.permute.xlu1 %734 }
 0x102   :  { %v1007_v26 = vpop.permute.xlu1 %1006 }
 0x106   :  { %v2569_v28 = vpop.permute.xlu1 %658 }
 0x10a   :  { %v2573_v30 = vpop.permute.xlu1 %662 }
 0x10e   :  { %v2577_v32 = vpop.permute.xlu1 %934 }
 0x112   :  { %v2579_v35 = vpop.permute.xlu1 %858 }
 0x116   :  { %v2581_v37 = vpop.permute.xlu1 %1010 }
 0x11a   :  { %v2585_v39 = vpop.permute.xlu1 %862 }
 0x11e   :  { %v2597_v45 = vpop.permute.xlu1 %938 }
 0x122   :  { %v2610_v53 = vpop.permute.xlu1 %942 }
 0x144   :  { %v1984_v58 = vpop.f32.mrf.mxu0 }
 0x146   :  { %v211_v59 = vpop.f32.mrf.mxu0 }
 0x147   :  { %1861 = vmatmul.mubr.msk.f32.vlgmr.msra.gmra.mxu1 %vm262_vm9, %v211_v59  ;;  %2002 = vmatprep.mubr.msk.f32.mxu0 %vm262_vm9, %v211_v59  ;;  %v2626_v59 = vpop.permute.xlu1 %1018 }
 0x148   :  { %2003 = vmatmul.mubr.msk.f32.vlgmr.msra.gmra.mxu0 %vm262_vm9, %v1984_v58  ;;  %357 = vmatprep.mubr.f32.mxu1 %v2193_v7  ;;  %v1987_v60 = vpop.f32.mrf.mxu0 }
 0x149   :  { %2015 = vmatpush3.msra.mxu0 %v1132_v52 }
 0x14a   :  { %v221_v61 = vpop.f32.mrf.mxu0  ;;  %2016 = vmatprep.subr.mxu0 %v1131_v54 }
 0x14b   :  { %1862 = vmatmul.mubr.msk.f32.gmra.mxu1 %vm262_vm9, %v1984_v58  ;;  %2005 = vmatprep.mubr.msk.f32.mxu0 %vm262_vm9, %v221_v61  ;;  %v1130_v58 = vld [vmem:[%s3050_s8 + $0x8] sm:$0xff] }
 0x14c   :  { %363 = vmatprep.mubr.f32.mxu1 %v2193_v7  ;;  %v1990_v62 = vpop.f32.mrf.mxu0  ;;  %2006 = vmatmul.mubr.msk.f32.gmra.mxu0 %vm262_vm9, %v1987_v60 }
 0x14d   :  { %2017 = vmatpush3.msra.mxu0 %v1131_v54 }
 0x14e   :  { %v231_v63 = vpop.f32.mrf.mxu0  ;;  %2018 = vmatprep.subr.mxu0 %v1130_v58 }
 0x14f   :  { %1863 = vmatmul.mubr.msk.f32.gmra.mxu1 %vm262_vm9, %v221_v61  ;;  %2008 = vmatprep.mubr.msk.f32.mxu0 %vm262_vm9, %v231_v63 }
 0x150   :  { %369 = vmatprep.mubr.f32.mxu1 %v2193_v7  ;;  %v1993_v0 = vpop.f32.mrf.mxu0  ;;  %2009 = vmatmul.mubr.msk.f32.gmra.mxu0 %vm262_vm9, %v1990_v62 }
 0x151   :  { %2019 = vmatpush3.msra.mxu0 %v1130_v58 }
 0x152   :  { %v241_v1 = vpop.f32.mrf.mxu0 }
 0x153   :  { %1864 = vmatmul.mubr.msk.f32.gmra.mxu1 %vm262_vm9, %v1987_v60  ;;  %2011 = vmatprep.mubr.msk.f32.mxu0 %vm262_vm9, %v241_v1 }
 0x154   :  { %375 = vmatprep.mubr.f32.mxu1 %v2193_v7  ;;  %2012 = vmatmul.mubr.msk.f32.gmra.mxu0 %vm262_vm9, %v1993_v0 }
 0x157   :  { %1865 = vmatmul.mubr.msk.f32.gmra.mxu1 %vm262_vm9, %v231_v63 }
 0x158   :  { %381 = vmatprep.mubr.f32.mxu1 %v2193_v7 }
 0x15b   :  { %1866 = vmatmul.mubr.msk.f32.gmra.mxu1 %vm262_vm9, %v1990_v62  ;;  %v1129_v62 = vld [vmem:[%s3050_s8] sm:$0xff] }
 0x15c   :  { %387 = vmatprep.mubr.f32.mxu1 %v2193_v7  ;;  %2020 = vmatprep.subr.mxu0 %v1129_v62 }
 0x15d   :  { %2021 = vmatpush3.msra.mxu0 %v1129_v62 }
 0x15f   :  { %1867 = vmatmul.mubr.msk.f32.gmra.mxu1 %vm262_vm9, %v241_v1 }
 0x160   :  { %393 = vmatprep.mubr.f32.mxu1 %v2193_v7 }
 0x163   :  { %1868 = vmatmul.mubr.msk.f32.gmra.mxu1 %vm262_vm9, %v1993_v0 }
 0x207   :  { %v2587_v40 = vpop.f32.mrf.mxu1 }
 0x208   :  { %v665_v41 = vmul.f32 %v635_v3, %v2587_v40  ;;  %v585_v42 = vmul.f32 %v555_v19, %v2587_v40  ;;  %v745_v46 = vmul.f32 %v715_v5, %v2587_v40  ;;  %v2642_v3 = vpop.permute.xlu1 %870 }
 0x209   :  { %v2593_v44 = vpop.f32.mrf.mxu1 }
 0x20a   :  { %681 = vrot.lane.b32.xlu1 %v665_v41, %s2202_s5  ;;  %601 = vrot.lane.b32.xlu0 %v585_v42, %s2203_s14  ;;  %v953_v47 = vmul.f32 %v923_v25, %v2593_v44  ;;  %v873_v49 = vmul.f32 %v843_v34, %v2593_v44  ;;  %v1033_v50 = vmul.f32 %v1003_v48, %v2593_v44 }
 0x20b   :  { %v2605_v51 = vpop.f32.mrf.mxu1 }
 0x20c   :  { %v586_v55 = vmul.f32 %v559_v2, %v2605_v51  ;;  %v666_v56 = vmul.f32 %v639_v15, %v2605_v51  ;;  %v746_v61 = vmul.f32 %v2537_v6, %v2605_v51 }
 0x20d   :  { %v2619_v57 = vpop.f32.mrf.mxu1 }
 0x20e   :  { %761 = vrot.lane.b32.xlu1 %v745_v46, %s2204_s4  ;;  %969 = vrot.lane.b32.xlu0 %v953_v47, %s2202_s5  ;;  %v954_v60 = vmul.f32 %v927_v16, %v2619_v57  ;;  %v1034_v0 = vmul.f32 %v1007_v26, %v2619_v57  ;;  %v874_v1 = vmul.f32 %v847_v36, %v2619_v57  ;;  %v2654_v16 = vpop.permute.xlu1 %946 }
 0x20f   :  { %v2634_v63 = vpop.f32.mrf.mxu1 }
 0x210   :  { %v747_v5 = vmul.f32 %v2543_v10, %v2634_v63  ;;  %v587_v6 = vmul.f32 %v2535_v4, %v2634_v63  ;;  %v667_v25 = vmul.f32 %v2539_v8, %v2634_v63  ;;  %v1015_v10 = vpop.permute.xlu0 %1014 }
 0x211   :  { %v2640_v2 = vpop.f32.mrf.mxu1 }
 0x212   :  { %1049 = vrot.lane.b32.xlu0 %v1033_v50, %s2204_s4  ;;  %889 = vrot.lane.b32.xlu1 %v873_v49, %s2203_s14  ;;  %v875_v19 = vmul.f32 %v2557_v20, %v2640_v2  ;;  %v955_v4 = vmul.f32 %v2567_v27, %v2640_v2  ;;  %v1035_v34 = vmul.f32 %v2581_v37, %v2640_v2  ;;  %v2670_v41 = vpop.permute.xlu1 %950 }
 0x213   :  { %v2650_v15 = vpop.f32.mrf.mxu1 }
 0x214   :  { %v1023_v8 = vpop.permute.xlu0 %1022  ;;  %v588_v20 = vmul.f32 %v2559_v21, %v2650_v15  ;;  %v668_v37 = vmul.f32 %v2553_v17, %v2650_v15  ;;  %v748_v21 = vmul.f32 %v2547_v12, %v2650_v15 }
 0x215   :  { %v2660_v26 = vpop.f32.mrf.mxu1 }
 0x216   :  { %683 = vrot.lane.b32.xlu0 %v666_v56, %s2202_s5  ;;  %603 = vrot.lane.b32.xlu1 %v586_v55, %s2203_s14  ;;  %v876_v42 = vmul.f32 %v2583_v38, %v2660_v26  ;;  %v2682_v27 = vpop.permute.xlu1 %1030  ;;  %v1036_v47 = vmul.f32 %v1015_v10, %v2660_v26  ;;  %v956_v54 = vmul.f32 %v2577_v32, %v2660_v26 }
 0x217   :  { %v2668_v36 = vpop.f32.mrf.mxu1 }
 0x218   :  { %v2689_v49 = vpop.permute.xlu0 %1026  ;;  %v589_v38 = vmul.f32 %v2541_v9, %v2668_v36  ;;  %v669_v12 = vmul.f32 %v2549_v13, %v2668_v36  ;;  %v749_v32 = vmul.f32 %v2555_v18, %v2668_v36 }
 0x219   :  { %v2678_v46 = vpop.f32.mrf.mxu1 }
 0x21a   :  { %763 = vrot.lane.b32.xlu0 %v746_v61, %s2204_s4  ;;  %971 = vrot.lane.b32.xlu1 %v954_v60, %s2202_s5  ;;  %v2699_v52 = vpop.permute.xlu1 %512  ;;  %v877_v62 = vmul.f32 %v2579_v35, %v2678_v46 }
 0x21b   :  { %v2687_v48 = vpop.f32.mrf.mxu1 }
 0x21c   :  { %v2703_v17 = vpop.permute.xlu0 %507 }
 0x21d   :  { %v2697_v50 = vpop.f32.mrf.mxu1 }
 0x21e   :  { %1051 = vrot.lane.b32.xlu1 %v1034_v0, %s2204_s4  ;;  %891 = vrot.lane.b32.xlu0 %v874_v1, %s2203_s14  ;;  %v958_v55 = vmul.f32 %v2610_v53, %v2697_v50  ;;  %v2711_v9 = vpop.permute.xlu1 %517  ;;  %v1038_v56 = vmul.f32 %v1023_v8, %v2697_v50 }
 0x21f   :  { %v2716_v58 = vpop.f32.mrf.mxu1 }
 0x220   :  { %v2718_v60 = vpop.permute.xlu0 %522  ;;  %v591_v53 = vmul.f32 %v2563_v23, %v2716_v58  ;;  %v671_v0 = vmul.f32 %v2569_v28, %v2716_v58  ;;  %v957_v23 = vmul.f32 %v2597_v45, %v2678_v46  ;;  %v1037_v28 = vmul.f32 %v2626_v59, %v2678_v46 }
 0x221   :  { %v2736_v1 = vpop.f32.mrf.mxu1  ;;  %v590_v45 = vmul.f32 %v2545_v11, %v2687_v48  ;;  %v750_v11 = vmul.f32 %v2565_v24, %v2687_v48 }
 0x222   :  { %765 = vrot.lane.b32.xlu1 %v747_v5, %s2204_s4  ;;  %605 = vrot.lane.b32.xlu0 %v587_v6, %s2203_s14  ;;  %v2726_v61 = vpop.permute.xlu1 %794  ;;  %v879_v5 = vmul.f32 %v2591_v43, %v2736_v1 }
 0x223   :  { %v2746_v6 = vpop.f32.mrf.mxu1 }
 0x224   :  { %v2730_v13 = vpop.permute.xlu0 %527  ;;  %v672_v10 = vmul.f32 %v2573_v30, %v2746_v6 }
 0x226   :  { %685 = vrot.lane.b32.xlu0 %v667_v25, %s2202_s5  ;;  %893 = vrot.lane.b32.xlu1 %v875_v19, %s2203_s14  ;;  %v2740_v18 = vpop.permute.xlu1 %798  ;;  %v592_v19 = vmul.f32 %v2561_v22, %v2746_v6  ;;  %v670_v22 = vmul.f32 %v2551_v14, %v2687_v48 }
 0x228   :  { %v2748_v35 = vpop.permute.xlu0 %532 }
 0x22a   :  { %1053 = vrot.lane.b32.xlu0 %v1035_v34, %s2204_s4  ;;  %973 = vrot.lane.b32.xlu1 %v955_v4, %s2202_s5  ;;  %v2756_v25 = vpop.permute.xlu1 %802  ;;  %v752_v4 = vmul.f32 %v2575_v31, %v2746_v6  ;;  %v2774_v34 = vpop.f32.mrf.mxu1  ;;  %v878_v31 = vmul.f32 %v2585_v39, %v2697_v50  ;;  %v1284_v39 = vld [vmem:[%s3052_s10 + $0x38] sm:$0xff] }
 0x22b   :  { %v960_v30 = vmul.f32 %v2670_v41, %v2774_v34  ;;  %v751_v41 = vmul.f32 %v2571_v29, %v2716_v58  ;;  %2034 = vmatprep.subr.mxu1 %v1284_v39 }
 0x22c   :  { %v2760_v43 = vpop.permute.xlu0 %806  ;;  %2035 = vmatpush3.msra.mxu1 %v1284_v39 }
 0x22e   :  { %607 = vrot.lane.b32.xlu1 %v588_v20, %s2203_s14  ;;  %895 = vrot.lane.b32.xlu0 %v876_v42, %s2203_s14  ;;  %v2768_v59 = vpop.permute.xlu1 %537  ;;  %v1040_v42 = vmul.f32 %v2682_v27, %v2774_v34  ;;  %v1283_v27 = vld [vmem:[%s3052_s10 + $0x30] sm:$0xff] }
 0x22f   :  { %2036 = vmatprep.subr.mxu1 %v1283_v27 }
 0x230   :  { %v2776_v8 = vpop.permute.xlu0 %810  ;;  %2037 = vmatpush3.msra.mxu1 %v1283_v27 }
 0x232   :  { %687 = vrot.lane.b32.xlu1 %v668_v37, %s2202_s5  ;;  %1055 = vrot.lane.b32.xlu0 %v1036_v47, %s2204_s4  ;;  %v2784_v20 = vpop.permute.xlu1 %542  ;;  %v959_v47 = vmul.f32 %v2654_v16, %v2736_v1  ;;  %v1282_v16 = vld [vmem:[%s3052_s10 + $0x28] sm:$0xff] }
 0x233   :  { %2038 = vmatprep.subr.mxu1 %v1282_v16 }
 0x234   :  { %v2788_v14 = vpop.permute.xlu0 %814  ;;  %2039 = vmatpush3.msra.mxu1 %v1282_v16 }
 0x236   :  { %767 = vrot.lane.b32.xlu1 %v748_v21, %s2204_s4  ;;  %609 = vrot.lane.b32.xlu0 %v589_v38, %s2203_s14  ;;  %v1083_v24 = vpop.permute.xlu1 %1082  ;;  %v880_v38 = vmul.f32 %v2642_v3, %v2774_v34 }
 0x238   :  { %v2798_v37 = vpop.permute.xlu0 %818 }
 0x23a   :  { %975 = vrot.lane.b32.xlu1 %v956_v54, %s2202_s5  ;;  %979 = vrot.lane.b32.xlu0 %v958_v55, %s2202_s5  ;;  %v2803_v21 = vpop.permute.xlu1 %1090  ;;  %v1281_v54 = vld [vmem:[%s3052_s10 + $0x20] sm:$0xff] }
 0x23b   :  { %2040 = vmatprep.subr.mxu1 %v1281_v54 }
 0x23c   :  { %v2812_v29 = vpop.permute.xlu0 %822  ;;  %2041 = vmatpush3.msra.mxu1 %v1281_v54 }
 0x23e   :  { %689 = vrot.lane.b32.xlu1 %v669_v12, %s2202_s5  ;;  %1059 = vrot.lane.b32.xlu0 %v1038_v56, %s2204_s4  ;;  %v2823_v55 = vpop.permute.xlu1 %1094  ;;  %v1039_v12 = vmul.f32 %v2689_v49, %v2736_v1 }
 0x240   :  { %v1087_v3 = vpop.permute.xlu0 %1086 }
 0x242   :  { %769 = vrot.lane.b32.xlu1 %v749_v32, %s2204_s4  ;;  %613 = vrot.lane.b32.xlu0 %v591_v53, %s2203_s14  ;;  %v2830_v32 = vpop.permute.xlu1 %1102 }
 0x244   :  { %v2828_v56 = vpop.permute.xlu0 %1098 }
 0x246   :  { %897 = vrot.lane.b32.xlu1 %v877_v62, %s2203_s14  ;;  %693 = vrot.lane.b32.xlu0 %v671_v0, %s2202_s5  ;;  %v2834_v62 = vpop.permute.xlu1 %1106  ;;  %v545_v0 = vmul.f32 %v2703_v17, %v2587_v40  ;;  %v546_v40 = vmul.f32 %v2699_v52, %v2605_v51 }
 0x248   :  { %v2832_v53 = vpop.permute.xlu0 %1110 }
 0x24a   :  { %977 = vrot.lane.b32.xlu1 %v957_v23, %s2202_s5  ;;  %901 = vrot.lane.b32.xlu0 %v879_v5, %s2203_s14 }
 0x24e   :  { %1057 = vrot.lane.b32.xlu1 %v1037_v28, %s2204_s4  ;;  %615 = vrot.lane.b32.xlu0 %v592_v19, %s2203_s14 }
 0x252   :  { %611 = vrot.lane.b32.xlu1 %v590_v45, %s2203_s14  ;;  %695 = vrot.lane.b32.xlu0 %v672_v10, %s2202_s5 }
 0x256   :  { %691 = vrot.lane.b32.xlu1 %v670_v22, %s2202_s5  ;;  %775 = vrot.lane.b32.xlu0 %v752_v4, %s2204_s4  ;;  %v825_v22 = vmul.f32 %v2726_v61, %v2593_v44  ;;  %v2004_v4 = vpop.f32.mrf.mxu0 }
 0x25a   :  { %771 = vrot.lane.b32.xlu1 %v750_v11, %s2204_s4  ;;  %983 = vrot.lane.b32.xlu0 %v960_v30, %s2202_s5 }
 0x25e   :  { %899 = vrot.lane.b32.xlu1 %v878_v31, %s2203_s14  ;;  %1063 = vrot.lane.b32.xlu0 %v1040_v42, %s2204_s4 }
 0x262   :  { %773 = vrot.lane.b32.xlu1 %v751_v41, %s2204_s4  ;;  %v466_v41 = vpop.f32.mrf.mxu0 }
 0x263   :  { %v1113_v27 = vmul.f32 %v1083_v24, %v466_v41 }
 0x266   :  { %981 = vrot.lane.b32.xlu1 %v959_v47, %s2202_s5 }
 0x26a   :  { %903 = vrot.lane.b32.xlu1 %v880_v38, %s2203_s14 }
 0x26e   :  { %1061 = vrot.lane.b32.xlu1 %v1039_v12, %s2204_s4 }
 0x27c   :  { %v682_v23 = vpop.permute.xlu1 %681  ;;  %v602_v5 = vpop.permute.xlu0 %601 }
 0x27d   :  { %v625_v49 = vadd.f32 %v602_v5, %v545_v0 }
 0x27f   :  { %v705_v28 = vadd.f32 %v682_v23, %v625_v49  ;;  %v826_v23 = vmul.f32 %v2740_v18, %v2619_v57  ;;  %v827_v18 = vmul.f32 %v2756_v25, %v2640_v2 }
 0x280   :  { %v762_v19 = vpop.permute.xlu1 %761  ;;  %v970_v45 = vpop.permute.xlu0 %969 }
 0x281   :  { %v785_v10 = vadd.f32 %v762_v19, %v705_v28 }
 0x283   :  { %v833_v11 = vadd.f32 %v825_v22, %v785_v10  ;;  %v547_v22 = vmul.f32 %v2711_v9, %v2634_v63 }
 0x284   :  { %v1050_v30 = vpop.permute.xlu0 %1049  ;;  %v890_v31 = vpop.permute.xlu1 %889 }
 0x285   :  { %v913_v42 = vadd.f32 %v890_v31, %v833_v11 }
 0x287   :  { %v993_v47 = vadd.f32 %v970_v45, %v913_v42  ;;  %v1114_v45 = vmul.f32 %v2004_v4, %v1087_v3  ;;  %v2007_v4 = vpop.f32.mrf.mxu0 }
 0x288   :  { %v684_v17 = vpop.permute.xlu0 %683  ;;  %v604_v39 = vpop.permute.xlu1 %603 }
 0x289   :  { %v1073_v38 = vadd.f32 %v1050_v30, %v993_v47  ;;  %v626_v16 = vadd.f32 %v604_v39, %v546_v40 }
 0x28b   :  { %v2842_v54 = vadd.f32 %v1113_v27, %v1073_v38  ;;  %v706_v12 = vadd.f32 %v684_v17, %v626_v16  ;;  %v476_v27 = vpop.f32.mrf.mxu0 }
 0x28c   :  { %v764_v0 = vpop.permute.xlu0 %763  ;;  %v972_v44 = vpop.permute.xlu1 %971  ;;  %v1115_v38 = vmul.f32 %v2803_v21, %v476_v27 }
 0x28d   :  { %v786_v61 = vadd.f32 %v764_v0, %v706_v12  ;;  %2022 = vmatprep.mubr.msk.f32.mxu0 %vm262_vm9, %v2842_v54  ;;  %v548_v12 = vmul.f32 %v2718_v60, %v2650_v15  ;;  %v549_v15 = vmul.f32 %v2730_v13, %v2668_v36 }
 0x28f   :  { %v834_v5 = vadd.f32 %v826_v23, %v786_v61 }
 0x290   :  { %v1052_v49 = vpop.permute.xlu1 %1051  ;;  %v892_v51 = vpop.permute.xlu0 %891 }
 0x291   :  { %v914_v52 = vadd.f32 %v892_v51, %v834_v5  ;;  %v828_v51 = vmul.f32 %v2760_v43, %v2660_v26  ;;  %v829_v26 = vmul.f32 %v2776_v8, %v2678_v46  ;;  %v550_v46 = vmul.f32 %v2748_v35, %v2687_v48 }
 0x293   :  { %v994_v28 = vadd.f32 %v972_v44, %v914_v52 }
 0x294   :  { %v766_v24 = vpop.permute.xlu1 %765  ;;  %v606_v19 = vpop.permute.xlu0 %605 }
 0x295   :  { %v1074_v10 = vadd.f32 %v1052_v49, %v994_v28  ;;  %v627_v30 = vadd.f32 %v606_v19, %v547_v22 }
 0x297   :  { %v2850_v11 = vadd.f32 %v1114_v45, %v1074_v10  ;;  %v1116_v10 = vmul.f32 %v2007_v4, %v2823_v55 }
 0x298   :  { %v686_v31 = vpop.permute.xlu0 %685  ;;  %v894_v42 = vpop.permute.xlu1 %893 }
 0x299   :  { %v707_v41 = vadd.f32 %v686_v31, %v627_v30  ;;  %2023 = vmatmul.mubr.msk.f32.vlgmr.msra.gmra.mxu0 %vm262_vm9, %v2850_v11 }
 0x29b   :  { %v787_v57 = vadd.f32 %v766_v24, %v707_v41 }
 0x29c   :  { %v1054_v47 = vpop.permute.xlu0 %1053  ;;  %v974_v40 = vpop.permute.xlu1 %973 }
 0x29d   :  { %v835_v3 = vadd.f32 %v827_v18, %v787_v57  ;;  %v2010_v18 = vpop.f32.mrf.mxu0 }
 0x29f   :  { %v915_v17 = vadd.f32 %v894_v42, %v835_v3  ;;  %v486_v4 = vpop.f32.mrf.mxu0 }
 0x2a0   :  { %v608_v39 = vpop.permute.xlu1 %607  ;;  %v896_v63 = vpop.permute.xlu0 %895 }
 0x2a1   :  { %v995_v9 = vadd.f32 %v974_v40, %v915_v17  ;;  %v628_v2 = vadd.f32 %v608_v39, %v548_v12  ;;  %v1117_v39 = vmul.f32 %v2828_v56, %v486_v4  ;;  %v830_v56 = vmul.f32 %v2788_v14, %v2697_v50 }
 0x2a3   :  { %v1075_v16 = vadd.f32 %v1054_v47, %v995_v9 }
 0x2a4   :  { %v688_v0 = vpop.permute.xlu1 %687  ;;  %v1056_v44 = vpop.permute.xlu0 %1055 }
 0x2a5   :  { %v2859_v61 = vadd.f32 %v1115_v38, %v1075_v16  ;;  %v708_v25 = vadd.f32 %v688_v0, %v628_v2 }
 0x2a7   :  { %2025 = vmatprep.mubr.msk.f32.mxu0 %vm262_vm9, %v2859_v61 }
 0x2a8   :  { %v768_v23 = vpop.permute.xlu1 %767  ;;  %v610_v5 = vpop.permute.xlu0 %609 }
 0x2a9   :  { %v788_v49 = vadd.f32 %v768_v23, %v708_v25  ;;  %v629_v22 = vadd.f32 %v610_v5, %v549_v15  ;;  %v551_v23 = vmul.f32 %v2768_v59, %v2716_v58  ;;  %v1118_v15 = vmul.f32 %v2010_v18, %v2830_v32  ;;  %v2013_v32 = vpop.f32.mrf.mxu0 }
 0x2aa   :  { %v831_v58 = vmul.f32 %v2798_v37, %v2736_v1  ;;  %v1279_v37 = vld [vmem:[%s3052_s10 + $0x10] sm:$0xff] }
 0x2ab   :  { %v836_v21 = vadd.f32 %v828_v51, %v788_v49 }
 0x2ac   :  { %v976_v52 = vpop.permute.xlu1 %975  ;;  %v980_v28 = vpop.permute.xlu0 %979 }
 0x2ad   :  { %v916_v24 = vadd.f32 %v896_v63, %v836_v21  ;;  %v552_v21 = vmul.f32 %v2784_v20, %v2746_v6  ;;  %v832_v6 = vmul.f32 %v2812_v29, %v2774_v34  ;;  %v1280_v20 = vld [vmem:[%s3052_s10 + $0x18] sm:$0xff]  ;;  %v1278_v34 = vld [vmem:[%s3052_s10 + $0x8] sm:$0xff]  ;;  %v496_v29 = vpop.f32.mrf.mxu0 }
 0x2ae   :  { %2042 = vmatprep.subr.mxu1 %v1280_v20 }
 0x2af   :  { %v996_v60 = vadd.f32 %v976_v52, %v916_v24  ;;  %2043 = vmatpush3.msra.mxu1 %v1280_v20  ;;  %v1894_v20 = vld [vmem:[%s3045_s3] ss:$0 sm:$0xff] }
 0x2b0   :  { %v690_v19 = vpop.permute.xlu1 %689  ;;  %v1060_v45 = vpop.permute.xlu0 %1059  ;;  %2044 = vmatprep.subr.mxu1 %v1279_v37 }
 0x2b1   :  { %v1076_v30 = vadd.f32 %v1056_v44, %v996_v60  ;;  %v709_v42 = vadd.f32 %v690_v19, %v629_v22  ;;  %2045 = vmatpush3.msra.mxu1 %v1279_v37 }
 0x2b2   :  { %2046 = vmatprep.subr.mxu1 %v1278_v34 }
 0x2b3   :  { %v2868_v31 = vadd.f32 %v1116_v10, %v1076_v30  ;;  %2047 = vmatpush3.msra.mxu1 %v1278_v34 }
 0x2b4   :  { %v770_v41 = vpop.permute.xlu1 %769  ;;  %v614_v43 = vpop.permute.xlu0 %613 }
 0x2b5   :  { %v789_v57 = vadd.f32 %v770_v41, %v709_v42  ;;  %2026 = vmatmul.mubr.msk.f32.gmra.mxu0 %vm262_vm9, %v2868_v31  ;;  %v631_v51 = vadd.f32 %v614_v43, %v551_v23 }
 0x2b7   :  { %v837_v36 = vadd.f32 %v829_v26, %v789_v57  ;;  %v1277_v26 = vld [vmem:[%s3052_s10] sm:$0xff] }
 0x2b8   :  { %v898_v13 = vpop.permute.xlu1 %897  ;;  %v694_v47 = vpop.permute.xlu0 %693  ;;  %2048 = vmatprep.subr.mxu1 %v1277_v26 }
 0x2b9   :  { %v917_v55 = vadd.f32 %v898_v13, %v837_v36  ;;  %v711_v35 = vadd.f32 %v694_v47, %v631_v51  ;;  %v1120_v47 = vmul.f32 %v2013_v32, %v2832_v53  ;;  %2049 = vmatpush3.msra.mxu1 %v1277_v26 }
 0x2bc   :  { %v978_v40 = vpop.permute.xlu1 %977  ;;  %v902_v9 = vpop.permute.xlu0 %901 }
 0x2bd   :  { %v997_v3 = vadd.f32 %v978_v40, %v917_v55  ;;  %v1119_v40 = vmul.f32 %v2834_v62, %v496_v29 }
 0x2c0   :  { %v1058_v17 = vpop.permute.xlu1 %1057  ;;  %v616_v8 = vpop.permute.xlu0 %615 }
 0x2c1   :  { %v1077_v63 = vadd.f32 %v1058_v17, %v997_v3  ;;  %v632_v52 = vadd.f32 %v616_v8, %v552_v21 }
 0x2c3   :  { %v2875_v27 = vadd.f32 %v1117_v39, %v1077_v63  ;;  %v1877_v39 = vld [vmem:[%s3051_s9] ss:$0 sm:$0xff] }
 0x2c4   :  { %v612_v38 = vpop.permute.xlu1 %611  ;;  %v696_v25 = vpop.permute.xlu0 %695 }
 0x2c5   :  { %2028 = vmatprep.mubr.msk.f32.mxu0 %vm262_vm9, %v2875_v27  ;;  %v630_v12 = vadd.f32 %v612_v38, %v550_v46  ;;  %v712_v10 = vadd.f32 %v696_v25, %v632_v52 }
 0x2c8   :  { %v692_v16 = vpop.permute.xlu1 %691  ;;  %v776_v60 = vpop.permute.xlu0 %775 }
 0x2c9   :  { %v710_v0 = vadd.f32 %v692_v16, %v630_v12  ;;  %v792_v59 = vadd.f32 %v776_v60, %v712_v10  ;;  %v2932_v60 = vld [vmem:[%s3042_s0] sm:$0xff] }
 0x2cb   :  { %v840_v1 = vadd.f32 %v832_v6, %v792_v59 }
 0x2cc   :  { %v772_v44 = vpop.permute.xlu1 %771 }
 0x2cd   :  { %v790_v2 = vadd.f32 %v772_v44, %v710_v0 }
 0x2cf   :  { %v838_v5 = vadd.f32 %v830_v56, %v790_v2 }
 0x2d0   :  { %v900_v49 = vpop.permute.xlu1 %899 }
 0x2d1   :  { %v918_v48 = vadd.f32 %v900_v49, %v838_v5 }
 0x2d3   :  { %v998_v24 = vadd.f32 %v980_v28, %v918_v48  ;;  %v984_v28 = vpop.permute.xlu0 %983 }
 0x2d4   :  { %v774_v19 = vpop.permute.xlu1 %773 }
 0x2d5   :  { %v1078_v50 = vadd.f32 %v1060_v45, %v998_v24  ;;  %v791_v14 = vadd.f32 %v774_v19, %v711_v35 }
 0x2d7   :  { %v2890_v22 = vadd.f32 %v1118_v15, %v1078_v50  ;;  %v839_v30 = vadd.f32 %v831_v58, %v791_v14  ;;  %v1064_v13 = vpop.permute.xlu0 %1063 }
 0x2d8   :  { %v982_v42 = vpop.permute.xlu1 %981 }
 0x2d9   :  { %2029 = vmatmul.mubr.msk.f32.gmra.mxu0 %vm262_vm9, %v2890_v22  ;;  %v919_v45 = vadd.f32 %v902_v9, %v839_v30 }
 0x2db   :  { %v999_v43 = vadd.f32 %v982_v42, %v919_v45  ;;  %v1416_v42 = vshrl.u32 %v70_v33, 7 }
 0x2dc   :  { %v904_v41 = vpop.permute.xlu1 %903 }
 0x2dd   :  { %v920_v57 = vadd.f32 %v904_v41, %v840_v1  ;;  %v1417_v32 = vadd.s32 8, %v1416_v42  ;;  %vm1422_vm11 = vcmp.eq.s32.totalorder %v1416_v42, %v1894_v20 }
 0x2df   :  { %v1000_v36 = vadd.f32 %v984_v28, %v920_v57  ;;  %vm1423_vm12 = vcmp.eq.s32.totalorder %v1417_v32, %v1894_v20  ;;  %v1895_v28 = vsel %vm1422_vm11, 1.0, %v2193_v7 }
 0x2e0   :  { %v1062_v18 = vpop.permute.xlu1 %1061 }
 0x2e1   :  { %v1080_v55 = vadd.f32 %v1064_v13, %v1000_v36  ;;  %v1079_v3 = vadd.f32 %v1062_v18, %v999_v43 }
 0x2e3   :  { %v2910_v4 = vadd.f32 %v1120_v47, %v1080_v55  ;;  %v2912_v17 = vadd.f32 %v1119_v40, %v1079_v3 }
 0x2e5   :  { %2031 = vmatprep.mubr.msk.f32.mxu0 %vm262_vm9, %v2912_v17 }
 0x2e6   :  { %2032 = vmatmul.mubr.msk.f32.gmra.mxu0 %vm262_vm9, %v2910_v4 }
 0x2e7   :  { %2078 = vmatprep.mubr.msk.f32.mxu0 %vm1285_vm10, %v1895_v28 }
 0x359   :  { %v2024_v53 = vpop.f32.mrf.mxu0 }
 0x35a   :  { %v1236_v63 = vadd.f32 %v2024_v53, %v1877_v39  ;;  %v1896_v53 = vsel %vm1423_vm12, 1.0, %v2193_v7  ;;  %v1594_v7 = vld [vmem:[%s3048_s6] sm:$0xff] }
 0x35b   :  { %v1230_v62 = vpop.f32.mrf.mxu0 }
 0x35c   :  { %v1231_v9 = vadd.f32 %v1877_v39, %v1230_v62  ;;  %v1270_v46 = vmax.f32 %v1236_v63, 0.0  ;;  %v1596_v63 = vld [vmem:[%s3048_s6 + $0x10] sm:$0xff]  ;;  %v2996_v62 = vld [vmem:[%s3042_s0 + $0x8] sm:$0xff]  ;;  %s2206_s0 = smov 127  }
 0x35e   :  { %v1269_v38 = vmax.f32 %v1231_v9, 0.0  ;;  %v1478_v9 = vld [vmem:[#allocation2 + $0x8] sm:$0xff] }
 0x360   :  { %2050 = vmatprep.mubr.msk.f32.mxu1 %vm1285_vm10, %v1269_v38 }
 0x361   :  { %2051 = vmatmul.mubr.msk.f32.vlgmr.msra.gmra.mxu1 %vm1285_vm10, %v1270_v46  ;;  %v1477_v46 = vld [vmem:[#allocation2] sm:$0xff] }
 0x375   :  { %v2027_v8 = vpop.f32.mrf.mxu0 }
 0x376   :  { %v1246_v16 = vadd.f32 %v2027_v8, %v1877_v39 }
 0x377   :  { %v1240_v12 = vpop.f32.mrf.mxu0 }
 0x378   :  { %v1241_v0 = vadd.f32 %v1877_v39, %v1240_v12  ;;  %v1272_v2 = vmax.f32 %v1246_v16, 0.0 }
 0x37a   :  { %v1271_v44 = vmax.f32 %v1241_v0, 0.0 }
 0x37c   :  { %2053 = vmatprep.mubr.msk.f32.mxu1 %vm1285_vm10, %v1271_v44 }
 0x37d   :  { %2054 = vmatmul.mubr.msk.f32.gmra.mxu1 %vm1285_vm10, %v1272_v2 }
 0x399   :  { %v2030_v56 = vpop.f32.mrf.mxu0 }
 0x39a   :  { %v1256_v25 = vadd.f32 %v2030_v56, %v1877_v39 }
 0x39b   :  { %v1250_v23 = vpop.f32.mrf.mxu0 }
 0x39c   :  { %v1251_v5 = vadd.f32 %v1877_v39, %v1250_v23  ;;  %v1274_v51 = vmax.f32 %v1256_v25, 0.0  ;;  %v2205_v25 = vmov 33  }
 0x39d   :  { %2162 = vset.pattern.permute.xlu1 %v2205_v25  ;;  %2163 = vset.pattern.permute.xlu0 %v2205_v25 }
 0x39e   :  { %v1273_v49 = vmax.f32 %v1251_v5, 0.0 }
 0x3a0   :  { %2056 = vmatprep.mubr.msk.f32.mxu1 %vm1285_vm10, %v1273_v49  ;;  %v1698_v49 = vld [vmem:[%s3053_s11] sm:$0xff] }
 0x3a1   :  { %2057 = vmatmul.mubr.msk.f32.gmra.mxu1 %vm1285_vm10, %v1274_v51 }
 0x3a6   :  { %v2033_v21 = vpop.f32.mrf.mxu0 }
 0x3a7   :  { %v1266_v48 = vadd.f32 %v2033_v21, %v1877_v39 }
 0x3a8   :  { %v1260_v35 = vpop.f32.mrf.mxu0 }
 0x3a9   :  { %v1261_v52 = vadd.f32 %v1877_v39, %v1260_v35  ;;  %v1276_v15 = vmax.f32 %v1266_v48, 0.0 }
 0x3ab   :  { %v1275_v24 = vmax.f32 %v1261_v52, 0.0 }
 0x3ad   :  { %2059 = vmatprep.mubr.msk.f32.mxu1 %vm1285_vm10, %v1275_v24 }
 0x3ae   :  { %2060 = vmatmul.mubr.msk.f32.gmra.mxu1 %vm1285_vm10, %v1276_v15  ;;  %v1699_v15 = vld [vmem:[%s3053_s11 + $0x8] sm:$0xff] }
 0x3af   :  { %2089 = vmatprep.mubr.msk.f32.mxu1 %vm262_vm9, %v2932_v60 }
 0x421   :  { %v2052_v19 = vpop.f32.mrf.mxu1 }
 0x423   :  { %v1376_v10 = vpop.f32.mrf.mxu1 }
 0x43d   :  { %v2055_v50 = vpop.f32.mrf.mxu1 }
 0x43f   :  { %v1386_v14 = vpop.f32.mrf.mxu1 }
 0x461   :  { %v2058_v58 = vpop.f32.mrf.mxu1 }
 0x463   :  { %v1396_v59 = vpop.f32.mrf.mxu1 }
 0x46e   :  { %v2061_v30 = vpop.f32.mrf.mxu1 }
 0x46f   :  { %1450 = vrot.lane.b32.xlu1 %v2061_v30, %s2204_s4  ;;  %v1901_v30 = vld [vmem:[%s3049_s7] ss:$0 sm:$0xff]  ;;  %s2207_s7 = smov [#allocation3]  }
 0x470   :  { %v1406_v6 = vpop.f32.mrf.mxu1 }
 0x471   :  { %1448 = vrot.lane.b32.xlu0 %v1406_v6, %s2204_s4 }
 0x473   :  { %1446 = vrot.lane.b32.xlu1 %v2058_v58, %s2204_s4 }
 0x475   :  { %1444 = vrot.lane.b32.xlu0 %v1396_v59, %s2204_s4 }
 0x477   :  { %1442 = vrot.lane.b32.xlu1 %v2055_v50, %s2204_s4 }
 0x479   :  { %1440 = vrot.lane.b32.xlu0 %v1386_v14, %s2204_s4 }
 0x47b   :  { %1438 = vrot.lane.b32.xlu1 %v2052_v19, %s2204_s4  ;;  %v1700_v19 = vld [vmem:[%s3053_s11 + $0x10] sm:$0xff] }
 0x47d   :  { %1436 = vrot.lane.b32.xlu0 %v1376_v10, %s2204_s4  ;;  %v1701_v10 = vld [vmem:[%s3053_s11 + $0x18] sm:$0xff]  ;;  %s1830_s11 = sshll.u32 %s2207_s7, 4  ;;  %s1831_s11 = int_to_ptr.vmem [resolvable:$true] %s1830_s11 }
 0x47e   :  { %s2170_s20 = scalar_lea.vmem %s1831_s11, 256  ;;  %p2175_p1 = scmp.lt.s32.totalorder %s1831_s11, %s1831_s11 }
 0x47f   :  { %p2171_p0 = scmp.ne.s32.totalorder %s1831_s11, %s2170_s20  ;;  %p2176_p2 = scmp.lt.s32.totalorder %s2170_s20, %s2170_s20 }
 0x481   :  { %p2177_p3 = por %p2176_p2, %p2175_p1 }
 0x483   :  { %p2178_p4 = pnand %p2177_p3, %p2171_p0 }
 0x4e1   :  { %v1451_v33 = vpop.permute.xlu1 %1450 }
 0x4e2   :  { %v1467_v45 = vsel %vm262_vm9, %v2910_v4, %v1451_v33 }
 0x4e3   :  { %v1449_v1 = vpop.permute.xlu0 %1448  ;;  %v1476_v37 = vsel %vm1468_vm14, %v1467_v45, 1.0 }
 0x4e4   :  { %v1466_v41 = vsel %vm262_vm9, %v2912_v17, %v1449_v1  ;;  %2062 = vmatprep.subr.mxu0 %v1476_v37 }
 0x4e5   :  { %2063 = vmatpush3.msra.mxu0 %v1476_v37  ;;  %v1447_v57 = vpop.permute.xlu1 %1446  ;;  %v1475_v34 = vsel %vm1468_vm14, %v1466_v41, 1.0 }
 0x4e6   :  { %v1465_v29 = vsel %vm262_vm9, %v2890_v22, %v1447_v57  ;;  %2064 = vmatprep.subr.mxu0 %v1475_v34 }
 0x4e7   :  { %2065 = vmatpush3.msra.mxu0 %v1475_v34  ;;  %v1445_v26 = vpop.permute.xlu0 %1444  ;;  %v1474_v43 = vsel %vm1468_vm14, %v1465_v29, 1.0 }
 0x4e8   :  { %v1464_v36 = vsel %vm262_vm9, %v2875_v27, %v1445_v26  ;;  %2066 = vmatprep.subr.mxu0 %v1474_v43 }
 0x4e9   :  { %v1443_v13 = vpop.permute.xlu1 %1442  ;;  %2067 = vmatpush3.msra.mxu0 %v1474_v43  ;;  %v1473_v18 = vsel %vm1468_vm14, %v1464_v36, 1.0 }
 0x4ea   :  { %v1463_v47 = vsel %vm262_vm9, %v2868_v31, %v1443_v13  ;;  %2068 = vmatprep.subr.mxu0 %v1473_v18 }
 0x4eb   :  { %2069 = vmatpush3.msra.mxu0 %v1473_v18  ;;  %v1441_v40 = vpop.permute.xlu0 %1440  ;;  %v1472_v22 = vsel %vm1468_vm14, %v1463_v47, 1.0 }
 0x4ec   :  { %v1462_v55 = vsel %vm262_vm9, %v2859_v61, %v1441_v40  ;;  %2070 = vmatprep.subr.mxu0 %v1472_v22 }
 0x4ed   :  { %v1439_v3 = vpop.permute.xlu1 %1438  ;;  %2071 = vmatpush3.msra.mxu0 %v1472_v22  ;;  %v1471_v27 = vsel %vm1468_vm14, %v1462_v55, 1.0 }
 0x4ee   :  { %v1461_v4 = vsel %vm262_vm9, %v2850_v11, %v1439_v3  ;;  %2072 = vmatprep.subr.mxu0 %v1471_v27  ;;  %v1597_v11 = vld [vmem:[%s3048_s6 + $0x18] sm:$0xff] }
 0x4ef   :  { %2073 = vmatpush3.msra.mxu0 %v1471_v27  ;;  %v1437_v17 = vpop.permute.xlu0 %1436  ;;  %v1470_v31 = vsel %vm1468_vm14, %v1461_v4, 1.0  ;;  %2081 = vmatprep.subr.mxu1 %v1597_v11 }
 0x4f0   :  { %v1460_v39 = vsel %vm262_vm9, %v2842_v54, %v1437_v17  ;;  %2074 = vmatprep.subr.mxu0 %v1470_v31  ;;  %2082 = vmatpush3.msra.mxu1 %v1597_v11  ;;  %v1595_v54 = vld [vmem:[%s3048_s6 + $0x8] sm:$0xff] }
 0x4f1   :  { %2075 = vmatpush3.msra.mxu0 %v1470_v31  ;;  %v1469_v61 = vsel %vm1468_vm14, %v1460_v39, 1.0  ;;  %2083 = vmatprep.subr.mxu1 %v1596_v63 }
 0x4f2   :  { %2076 = vmatprep.subr.mxu0 %v1469_v61  ;;  %2084 = vmatpush3.msra.mxu1 %v1596_v63 }
 0x4f3   :  { %2077 = vmatpush3.msra.mxu0 %v1469_v61  ;;  %2085 = vmatprep.subr.mxu1 %v1595_v54 }
 0x4f4   :  { %2079 = vmatmul.mubr.msk.f32.vlgmr.msra.gmra.mxu0 %vm1285_vm10, %v1896_v53  ;;  %2086 = vmatpush3.msra.mxu1 %v1595_v54 }
 0x4f5   :  { %2087 = vmatprep.subr.mxu1 %v1594_v7  ;;  %2096 = vmatprep.mubr.msk.f32.mxu0 %vm120_vm0, %v1698_v49 }
 0x4f6   :  { %2088 = vmatpush3.msra.mxu1 %v1594_v7 }
 0x4f7   :  { %2090 = vmatmul.mubr.msk.f32.vlgmr.msra.gmra.mxu1 %vm262_vm9, %v2996_v62 }
 0x5b4   :  { %v2080_v38 = vpop.f32.mrf.mxu0 }
 0x5b5   :  { %v1561_v8 = vadd.f32 %v2080_v38, %v1478_v9 }
 0x5b6   :  { %v1551_v16 = vpop.f32.mrf.mxu0 }
 0x5b7   :  { %1564 = vst.msk [vmem:[#allocation2 + $0x8] sm:$0xff] %vm48_vm13, %v1561_v8  ;;  %v1560_v12 = vadd.f32 %v1551_v16, %v1477_v46  ;;  %v2091_v50 = vpop.f32.mrf.mxu1 }
 0x5b9   :  { %1563 = vst.msk [vmem:[#allocation2] sm:$0xff] %vm48_vm13, %v1560_v12  ;;  %v1670_v58 = vpop.f32.mrf.mxu1 }
 0x5be   :  { %v1569_v0 = vld [vmem:[#allocation2 + $0x8] sm:$0xff] }
 0x5bf   :  { %v1571_v44 = vmax.f32 %v1569_v0, 1.0 }
 0x5c0   :  { %v1568_v2 = vld [vmem:[#allocation2] sm:$0xff] }
 0x5c1   :  { %2164 = vrcp.f32 %v1571_v44  ;;  %v1570_v56 = vmax.f32 %v1568_v2, 1.0 }
 0x5c3   :  { %2166 = vrcp.f32 %v1570_v56 }
 0x5ce   :  { %v2165_v23 = vpop.eup %2164 }
 0x5cf   :  { %1588 = vrot.lane.b32.xlu1 %v2165_v23, %s2206_s0 }
 0x5d0   :  { %v2167_v5 = vpop.eup %2166 }
 0x5d1   :  { %1586 = vrot.lane.b32.xlu0 %v2167_v5, %s2206_s0 }
 0x641   :  { %v1589_v51 = vpop.permute.xlu1 %1588 }
 0x642   :  { %v1593_v21 = vmul.f32 %v1589_v51, %v1569_v0 }
 0x643   :  { %v1587_v48 = vpop.permute.xlu0 %1586 }
 0x644   :  { %v1592_v35 = vmul.f32 %v1587_v48, %v1568_v2  ;;  %1706 = vrot.lane.b32.xlu1 %v1593_v21, %s2203_s14 }
 0x646   :  { %1704 = vrot.lane.b32.xlu0 %v1592_v35, %s2203_s14 }
 0x648   :  { %1576 = vperm.xlu1 %2162, %v2167_v5  }
 0x64a   :  { %1581 = vperm.xlu0 %2163, %v2165_v23  }
 0x6b6   :  { %v1707_v52 = vpop.permute.xlu1 %1706 }
 0x6b7   :  { %2092 = vmatprep.subr.mxu0 %v1707_v52 }
 0x6b8   :  { %2093 = vmatpush3.msra.mxu0 %v1707_v52  ;;  %v1705_v24 = vpop.permute.xlu0 %1704 }
 0x6b9   :  { %2094 = vmatprep.subr.mxu0 %v1705_v24 }
 0x6ba   :  { %2095 = vmatpush3.msra.mxu0 %v1705_v24 }
 0x6bb   :  { %2097 = vmatmul.mubr.msk.f32.vlgmr.msra.gmra.mxu0 %vm120_vm0, %v1699_v15 }
 0x6bc   :  { %2099 = vmatprep.mubr.msk.f32.mxu0 %vm120_vm0, %v1700_v19 }
 0x6bf   :  { %2100 = vmatmul.mubr.msk.f32.gmra.mxu0 %vm120_vm0, %v1701_v10 }
 0x6c3   :  { %v1577_v14 = vpop.permute.xlu1 %1576 }
 0x6c4   :  { %v1584_v59 = vmul.f32 %v1577_v14, %v1568_v2 }
 0x6c5   :  { %v1582_v42 = vpop.permute.xlu0 %1581 }
 0x6c6   :  { %v1679_v6 = vadd.f32 %v1670_v58, %v1584_v59  ;;  %v1585_v20 = vmul.f32 %v1582_v42, %v1569_v0 }
 0x6c8   :  { %v1688_v32 = vadd.f32 %v1901_v30, %v1679_v6  ;;  %v1680_v28 = vadd.f32 %v2091_v50, %v1585_v20 }
 0x6ca   :  { %v1690_v33 = vmax.f32 %v1688_v32, 0.0  ;;  %v1689_v45 = vadd.f32 %v1901_v30, %v1680_v28 }
 0x6cc   :  { %v1692_v1 = vmul.f32 0.33333334, %v1690_v33  ;;  %v1691_v37 = vmax.f32 %v1689_v45, 0.0 }
 0x6ce   :  { %v1694_v41 = vadd.f32 %v2932_v60, %v1692_v1  ;;  %v1693_v57 = vmul.f32 0.33333334, %v1691_v37 }
 0x6d0   :  { %1696 = vst.msk [vmem:[#allocation3] sm:$0xff] %vm262_vm9, %v1694_v41  ;;  %v1695_v34 = vadd.f32 %v2996_v62, %v1693_v57 }
 0x6d2   :  { %1697 = vst.msk [vmem:[#allocation3 + $0x8] sm:$0xff] %vm262_vm9, %v1695_v34 }
 0x77b   :  { %v2098_v29 = vpop.f32.mrf.mxu0 }
 0x77d   :  { %v1788_v26 = vpop.f32.mrf.mxu0 }
 0x77e   :  { %2181 = shalt.err (!%p2178_p4)
}
 0x77f   :  { %s2208_s9 = smov 128   ;;  %s2209_s21 = smov 8   ;;  %v2101_v60 = vpop.f32.mrf.mxu0  ;;  %vm1817_vm15 = vcmask 7168   ;;  %v1807_v36 = vld [vmem:[%s3043_s1] sm:$0xff]  ;;  %vm1822_vm0 = vcmask 15360   ;;  %v1808_v40 = vld [vmem:[%s3043_s1 + $0x8] sm:$0xff] }
 0x780   :  { %1836 = dma.vmem_to_hbm [thread:$0]  %s1831_s11, 256, %s3054_s12, [#allocation4], %s2208_s9, %s2208_s9, %s2209_s21  }
 0x781   :  { %v1798_v43 = vpop.f32.mrf.mxu0  ;;  %s2210_s3 = smov 1  }
 0x782   :  { %1811 = vrot.lane.b32.xlu1 %v1798_v43, %s2210_s3 }
 0x786   :  { %1813 = vrot.lane.b32.xlu1 %v2101_v60, %s2210_s3 }
 0x7f4   :  { %v1812_v13 = vpop.permute.xlu1 %1811 }
 0x7f5   :  { %v1818_v18 = vsel %vm1817_vm15, %v1788_v26, %v1812_v13 }
 0x7f6   :  { %v1820_v47 = vadd.f32 %v1818_v18, %v1807_v36 }
 0x7f8   :  { %1823 = vst.msk [vmem:[%s3055_s13] sm:$0xff] %vm1822_vm0, %v1820_v47  ;;  %v1814_v22 = vpop.permute.xlu1 %1813 }
 0x7f9   :  { %v1819_v55 = vsel %vm1817_vm15, %v2098_v29, %v1814_v22 }
 0x7fa   :  { %v1821_v3 = vadd.f32 %v1819_v55, %v1808_v40 }
 0x7fc   :  { %1824 = vst.msk [vmem:[%s3055_s13 + $0x8] sm:$0xff] %vm1822_vm0, %v1821_v3 }
 0x7fd   :  { %2190 = dma.done.wait [#allocation4], 256  }
 0x7fe   :  { %2191 = vsyncadd [#allocation4], 4294967040 }
 0x7ff   :  { %1844 = vsyncpa [#allocation4], 1 }

</bundles_post_ra>
